<compile_context>
chip_gen: v7x
topology: tpu7x:2x2x1
jax: 0.10.0
libtpu: 0.0.40
codegen_flags: <defaults>
</compile_context>

<pallas_src>
import jax
import jax.numpy as jnp
from jax.experimental import pallas as pl
from jax.experimental.pallas import tpu as pltpu


def _se_kernel(x_ref, w1_ref, b1_ref, w2_ref, b2_ref, o_ref):
    # x_ref / o_ref : (bt, C, HW) block of the input / output.
    # w1_ref        : (hidden, C)   -- PyTorch nn.Linear layout (out, in)
    # b1_ref        : (1, hidden)
    # w2_ref        : (C, hidden)
    # b2_ref        : (1, C)
    x = x_ref[...]

    # Squeeze: global average pool over the lane-dense spatial axis (f32 acc).
    pooled = jnp.mean(x.astype(jnp.float32), axis=-1)              # (bt, C)

    w1 = w1_ref[...].astype(jnp.float32)                           # (hidden, C)
    b1 = b1_ref[...].astype(jnp.float32)                           # (1, hidden)
    w2 = w2_ref[...].astype(jnp.float32)                           # (C, hidden)
    b2 = b2_ref[...].astype(jnp.float32)                           # (1, C)

    # Excite, FC1 + ReLU:  (bt,1,C) * (1,hidden,C) -> lane-reduce over C.
    h = jnp.sum(pooled[:, None, :] * w1[None, :, :], axis=-1) + b1  # (bt, hidden)
    h = jnp.maximum(h, 0.0)

    # FC2 + sigmoid:  (bt,1,hidden) * (1,C,hidden) -> lane-reduce over hidden.
    z = jnp.sum(h[:, None, :] * w2[None, :, :], axis=-1) + b2       # (bt, C)
    scale = 1.0 / (1.0 + jnp.exp(-z))                               # sigmoid

    # Scale: broadcast (bt, C, 1) over the spatial axis.  Multiply in x's own
    # dtype so bf16 inputs never need a full-block f32 temporary.
    o_ref[...] = x * scale.astype(x.dtype)[:, :, None]


def se_layer(x, w1, b1, w2, b2):
    """Pallas SELayer forward.

    x  : (B, C, H, W)
    w1 : (hidden, C), b1 : (hidden,)     (PyTorch nn.Linear layout: (out, in))
    w2 : (C, hidden), b2 : (C,)
    """
    B, C, H, W = x.shape
    hidden = w1.shape[0]
    assert w1.shape == (hidden, C) and w2.shape == (C, hidden)
    assert b1.shape == (hidden,) and b2.shape == (C,)

    HW = H * W
    x3 = x.reshape(B, C, HW)          # lane-dense trailing dim (multiple of 128
                                      # whenever H*W is; free reshape for NCHW)
    b1_2d = b1.reshape(1, hidden)
    b2_2d = b2.reshape(1, C)

    # Batch tile: pack as many samples per grid step as fit a ~2 MiB block.
    # Double-buffered in + out (~4x block) stays well under v7x's 32 MiB
    # scoped-VMEM default while amortizing the ~0.35 us per-step overhead.
    per_sample_bytes = C * HW * x.dtype.itemsize
    bt = max(1, min(B, (2 << 20) // max(per_sample_bytes, 1)))
    while B % bt:                     # keep the grid exact
        bt -= 1
    grid = (B // bt,)

    whole = lambda i: (0, 0)          # tiny params: full array every step

    out3 = pl.pallas_call(
        _se_kernel,
        out_shape=jax.ShapeDtypeStruct((B, C, HW), x.dtype),
        grid_spec=pltpu.PrefetchScalarGridSpec(
            num_scalar_prefetch=0,
            grid=grid,
            in_specs=[
                pl.BlockSpec((bt, C, HW), lambda i: (i, 0, 0)),
                pl.BlockSpec((hidden, C), whole),
                pl.BlockSpec((1, hidden), whole),
                pl.BlockSpec((C, hidden), whole),
                pl.BlockSpec((1, C), whole),
            ],
            out_specs=pl.BlockSpec((bt, C, HW), lambda i: (i, 0, 0)),
        ),
        compiler_params=pltpu.CompilerParams(
            dimension_semantics=("parallel",),
        ),
    )(x3, w1, b1_2d, w2, b2_2d)

    return out3.reshape(B, C, H, W)


def _se_layer_ref(x, w1, b1, w2, b2):
    """Pure-JAX reference of the SELayer forward, for correctness checking."""
    xf = x.astype(jnp.float32)
    pooled = jnp.mean(xf, axis=(2, 3))                              # (B, C)
    h = jnp.maximum(pooled @ w1.astype(jnp.float32).T + b1, 0.0)    # (B, hidden)
    z = h @ w2.astype(jnp.float32).T + b2                           # (B, C)
    y = 1.0 / (1.0 + jnp.exp(-z))
    return x * y.astype(x.dtype)[:, :, None, None]


if __name__ == "__main__":
    key = jax.random.PRNGKey(0)
    kx, k1, k2, k3, k4 = jax.random.split(key, 5)

    # Small shapes consistent with the module: channel=64, reduction=16.
    B, C, H, W = 2, 64, 16, 16
    reduction = 16
    hidden = C // reduction

    x = jax.random.normal(kx, (B, C, H, W), dtype=jnp.float32)
    w1 = jax.random.normal(k1, (hidden, C), dtype=jnp.float32) / jnp.sqrt(C)
    b1 = jax.random.normal(k2, (hidden,), dtype=jnp.float32) * 0.1
    w2 = jax.random.normal(k3, (C, hidden), dtype=jnp.float32) / jnp.sqrt(hidden)
    b2 = jax.random.normal(k4, (C,), dtype=jnp.float32) * 0.1

    out = se_layer(x, w1, b1, w2, b2)
    out = jax.block_until_ready(out)

    ref = _se_layer_ref(x, w1, b1, w2, b2)
    assert out.shape == x.shape and out.dtype == x.dtype
    assert jnp.allclose(out, ref, atol=1e-5, rtol=1e-5), float(
        jnp.max(jnp.abs(out - ref)))

    print("KERNEL_OK")
</pallas_src>

<mosaic_0001>
module attributes {stable_mosaic.version = 11 : i64} {
  func.func @_se_kernel(%arg0: i32, %arg1: memref<2x64x256xf32, #tpu.memory_space<vmem>>, %arg2: memref<4x64xf32, #tpu.memory_space<vmem>>, %arg3: memref<1x4xf32, #tpu.memory_space<vmem>>, %arg4: memref<64x4xf32, #tpu.memory_space<vmem>>, %arg5: memref<1x64xf32, #tpu.memory_space<vmem>>, %arg6: memref<2x64x256xf32, #tpu.memory_space<vmem>>) attributes {dimension_semantics = [#tpu.dimension_semantics<parallel>], iteration_bounds = array<i64: 1>, scalar_prefetch = 0 : i64, scratch_operands = 0 : i64, tpu.core_type = #tpu.core_type<tc>, window_params = [{transform_indices = @transform_0, window_bounds = array<i64: 2, 64, 256>}, {pipeline_mode = #tpu.pipeline_mode<synchronous>, transform_indices = @transform_1, window_bounds = array<i64: 4, 64>}, {pipeline_mode = #tpu.pipeline_mode<synchronous>, transform_indices = @transform_2, window_bounds = array<i64: 1, 4>}, {pipeline_mode = #tpu.pipeline_mode<synchronous>, transform_indices = @transform_3, window_bounds = array<i64: 64, 4>}, {pipeline_mode = #tpu.pipeline_mode<synchronous>, transform_indices = @transform_4, window_bounds = array<i64: 1, 64>}, {transform_indices = @transform_5, window_bounds = array<i64: 2, 64, 256>}]} {
    %c0 = arith.constant 0 : index
    %c0_0 = arith.constant 0 : index
    %c0_1 = arith.constant 0 : index
    %0 = vector.load %arg1[%c0, %c0_0, %c0_1] : memref<2x64x256xf32, #tpu.memory_space<vmem>>, vector<2x64x256xf32>
    %cst = arith.constant dense<0.000000e+00> : vector<2x64xf32>
    %1 = vector.multi_reduction <add>, %0, %cst [2] : vector<2x64x256xf32> to vector<2x64xf32>
    %cst_2 = arith.constant 2.560000e+02 : f32
    %2 = vector.broadcast %cst_2 : f32 to vector<2x64xf32>
    %3 = arith.divf %1, %2 : vector<2x64xf32>
    %c0_3 = arith.constant 0 : index
    %c0_4 = arith.constant 0 : index
    %4 = vector.load %arg2[%c0_3, %c0_4] : memref<4x64xf32, #tpu.memory_space<vmem>>, vector<4x64xf32>
    %c0_5 = arith.constant 0 : index
    %c0_6 = arith.constant 0 : index
    %5 = vector.load %arg3[%c0_5, %c0_6] : memref<1x4xf32, #tpu.memory_space<vmem>>, vector<1x4xf32>
    %c0_7 = arith.constant 0 : index
    %c0_8 = arith.constant 0 : index
    %6 = vector.load %arg4[%c0_7, %c0_8] : memref<64x4xf32, #tpu.memory_space<vmem>>, vector<64x4xf32>
    %c0_9 = arith.constant 0 : index
    %c0_10 = arith.constant 0 : index
    %7 = vector.load %arg5[%c0_9, %c0_10] : memref<1x64xf32, #tpu.memory_space<vmem>>, vector<1x64xf32>
    %8 = vector.shape_cast %3 : vector<2x64xf32> to vector<2x1x64xf32>
    %9 = vector.shape_cast %4 : vector<4x64xf32> to vector<1x4x64xf32>
    %10 = vector.broadcast %8 : vector<2x1x64xf32> to vector<2x4x64xf32>
    %11 = vector.broadcast %9 : vector<1x4x64xf32> to vector<2x4x64xf32>
    %12 = arith.mulf %10, %11 : vector<2x4x64xf32>
    %cst_11 = arith.constant dense<0.000000e+00> : vector<2x4xf32>
    %13 = vector.multi_reduction <add>, %12, %cst_11 [2] : vector<2x4x64xf32> to vector<2x4xf32>
    %14 = vector.broadcast %5 : vector<1x4xf32> to vector<2x4xf32>
    %15 = arith.addf %13, %14 : vector<2x4xf32>
    %cst_12 = arith.constant 0.000000e+00 : f32
    %16 = vector.broadcast %cst_12 : f32 to vector<2x4xf32>
    %17 = arith.maximumf %15, %16 : vector<2x4xf32>
    %18 = vector.shape_cast %17 : vector<2x4xf32> to vector<2x1x4xf32>
    %19 = vector.shape_cast %6 : vector<64x4xf32> to vector<1x64x4xf32>
    %20 = vector.broadcast %18 : vector<2x1x4xf32> to vector<2x64x4xf32>
    %21 = vector.broadcast %19 : vector<1x64x4xf32> to vector<2x64x4xf32>
    %22 = arith.mulf %20, %21 : vector<2x64x4xf32>
    %cst_13 = arith.constant dense<0.000000e+00> : vector<2x64xf32>
    %23 = vector.multi_reduction <add>, %22, %cst_13 [2] : vector<2x64x4xf32> to vector<2x64xf32>
    %24 = vector.broadcast %7 : vector<1x64xf32> to vector<2x64xf32>
    %25 = arith.addf %23, %24 : vector<2x64xf32>
    %cst_14 = arith.constant 0.000000e+00 : f32
    %26 = vector.broadcast %cst_14 : f32 to vector<2x64xf32>
    %27 = arith.subf %26, %25 : vector<2x64xf32>
    %28 = math.exp %27 : vector<2x64xf32>
    %cst_15 = arith.constant 1.000000e+00 : f32
    %29 = vector.broadcast %cst_15 : f32 to vector<2x64xf32>
    %30 = arith.addf %29, %28 : vector<2x64xf32>
    %cst_16 = arith.constant 1.000000e+00 : f32
    %31 = vector.broadcast %cst_16 : f32 to vector<2x64xf32>
    %32 = arith.divf %31, %30 : vector<2x64xf32>
    %33 = vector.shape_cast %32 : vector<2x64xf32> to vector<2x64x1xf32>
    %34 = vector.broadcast %33 : vector<2x64x1xf32> to vector<2x64x256xf32>
    %35 = arith.mulf %0, %34 : vector<2x64x256xf32>
    %c0_17 = arith.constant 0 : index
    %c0_18 = arith.constant 0 : index
    %c0_19 = arith.constant 0 : index
    %36 = vector.load %arg6[%c0_17, %c0_18, %c0_19] : memref<2x64x256xf32, #tpu.memory_space<vmem>>, vector<2x64x256xf32>
    tpu.vector_store %arg6[%c0_17, %c0_18, %c0_19], %35 {strides = array<i32>} : memref<2x64x256xf32, #tpu.memory_space<vmem>>, vector<2x64x256xf32>,
    return
  }
  func.func @transform_0(%arg0: i32) -> (i32, i32, i32) {
    %c0_i32 = arith.constant 0 : i32
    %c0_i32_0 = arith.constant 0 : i32
    %c0_i32_1 = arith.constant 0 : i32
    return %arg0, %c0_i32, %c0_i32_0 : i32, i32, i32
  }
  func.func @transform_1(%arg0: i32) -> (i32, i32) {
    %c0_i32 = arith.constant 0 : i32
    %c0_i32_0 = arith.constant 0 : i32
    %c0_i32_1 = arith.constant 0 : i32
    return %c0_i32, %c0_i32_0 : i32, i32
  }
  func.func @transform_2(%arg0: i32) -> (i32, i32) {
    %c0_i32 = arith.constant 0 : i32
    %c0_i32_0 = arith.constant 0 : i32
    %c0_i32_1 = arith.constant 0 : i32
    return %c0_i32, %c0_i32_0 : i32, i32
  }
  func.func @transform_3(%arg0: i32) -> (i32, i32) {
    %c0_i32 = arith.constant 0 : i32
    %c0_i32_0 = arith.constant 0 : i32
    %c0_i32_1 = arith.constant 0 : i32
    return %c0_i32, %c0_i32_0 : i32, i32
  }
  func.func @transform_4(%arg0: i32) -> (i32, i32) {
    %c0_i32 = arith.constant 0 : i32
    %c0_i32_0 = arith.constant 0 : i32
    %c0_i32_1 = arith.constant 0 : i32
    return %c0_i32, %c0_i32_0 : i32, i32
  }
  func.func @transform_5(%arg0: i32) -> (i32, i32, i32) {
    %c0_i32 = arith.constant 0 : i32
    %c0_i32_0 = arith.constant 0 : i32
    %c0_i32_1 = arith.constant 0 : i32
    return %arg0, %c0_i32, %c0_i32_0 : i32, i32, i32
  }
}

</mosaic_0001>

<bundles_post_ra>
// kernel: tpu_custom_call.1
= control target key start
LH: loop header
LB: loop body
LE: loop exit
PB: predicated region body
PF: predicated region fallthrough
CT: control target
= control target key end

     0   :  { %10 = vsyncpa [#allocation3], 0  ;;  %s4940_s0 = inlined_call_operand.hbm [shape: f32[2,64,256], index: 0, kind: input, shape index: {}]   ;;  %s4941_s1 = inlined_call_operand.vmem [shape: f32[4,64], index: 1, kind: input, shape index: {}]   ;;  %s4942_s2 = inlined_call_operand.vmem [shape: f32[1,4], index: 2, kind: input, shape index: {}]   ;;  %s4943_s3 = inlined_call_operand.vmem [shape: f32[64,4], index: 3, kind: input, shape index: {}]   ;;  %s4944_s4 = inlined_call_operand.vmem [shape: f32[1,64], index: 4, kind: input, shape index: {}]   ;;  %s4945_s5 = inlined_call_operand.hbm [shape: f32[2,64,256], index: 5, kind: output, shape index: {}]  }
   0x1   :  { %11 = vsyncpa [#allocation4], 0  ;;  %s3318_s18 = smov [#allocation2]   ;;  %s3270_s22 = scalar_lea.hbm %s4940_s0, 4096 }
   0x2   :  { %s17_s19 = sshll.u32 %s3318_s18, 4  ;;  %p3271_p0 = scmp.ne.s32.totalorder %s4940_s0, %s3270_s22  ;;  %s18_s19 = int_to_ptr.vmem [resolvable:$true] %s17_s19 }
   0x3   :  { %p3274_p1 = scmp.lt.u32.totalorder %s3270_s22, %s4940_s0 }
   0x5   :  { %p3276_p2 = pnand %p3274_p1, %p3271_p0 }
   0x7   :  { %3279 = shalt.err (!%p3276_p2)
}
   0x8   :  { %s3280_s27 = scalar_lea.vmem %s18_s19, 4096  ;;  %p3285_p4 = scmp.lt.s32.totalorder %s18_s19, %s18_s19 }
   0x9   :  { %p3281_p3 = scmp.ne.s32.totalorder %s18_s19, %s3280_s27  ;;  %p3286_p5 = scmp.lt.s32.totalorder %s3280_s27, %s3280_s27 }
   0xb   :  { %p3287_p6 = por %p3286_p5, %p3285_p4 }
   0xd   :  { %p3288_p7 = pnand %p3287_p6, %p3281_p3 }
   0xf   :  { %3291 = shalt.err (!%p3288_p7)
}
  0x10   :  { %s3319_s28 = smov 256   ;;  %s3320_s29 = smov 16  }
  0x11   :  { %23 = dma.hbm_to_vmem [thread:$0]  %s4940_s0, 4096, %s18_s19, [#allocation3], %s3319_s28, %s3319_s28, %s3320_s29  }
  0x12   :  { %3314 = dma.done.wait [#allocation3], 4096  }
  0x13   :  { %3315 = vsyncadd [#allocation3], 4294963200  ;;  %v39_v0 = vld [vmem:[#allocation2 + $0x20] sm:$0xff]  ;;  %v40_v1 = vld [vmem:[#allocation2 + $0x28] sm:$0xff]  ;;  %v144_v48 = vlaneseq  ;;  %v3321_v53 = vmov 0   ;;  %vm647_vm0 = vcmask 130112  }
  0x14   :  { %v35_v2 = vld [vmem:[#allocation2] sm:$0xff]  ;;  %v73_v3 = vadd.f32 %v40_v1, %v39_v0  ;;  %v36_v4 = vld [vmem:[#allocation2 + $0x8] sm:$0xff]  ;;  %v41_v5 = vld [vmem:[#allocation2 + $0x30] sm:$0xff]  ;;  %3173 = vset.pattern.permute.xlu1 %v3321_v53  ;;  %3172 = vset.pattern.permute.xlu0 %v3321_v53  ;;  %vm654_vm1 = vcmask 195712   ;;  %vm661_vm2 = vcmask 261312   ;;  %vm668_vm3 = vcmask 326912  }
  0x15   :  { %v42_v6 = vld [vmem:[#allocation2 + $0x38] sm:$0xff]  ;;  %v67_v7 = vadd.f32 %v36_v4, %v35_v2  ;;  %v37_v8 = vld [vmem:[#allocation2 + $0x10] sm:$0xff]  ;;  %v43_v14 = vld [vmem:[#allocation2 + $0x40] sm:$0xff]  ;;  %v3369_v49 = vshrl.u32 %v144_v48, 7  ;;  %vm675_vm4 = vcmask 392512   ;;  %vm682_vm5 = vcmask 458112  }
  0x16   :  { %v38_v9 = vld [vmem:[#allocation2 + $0x18] sm:$0xff]  ;;  %74 = vadd.xlane.f32.xlu1 %v73_v3  ;;  %v76_v10 = vadd.f32 %v42_v6, %v41_v5  ;;  %v45_v12 = vld [vmem:[#allocation2 + $0x50] sm:$0xff]  ;;  %v44_v15 = vld [vmem:[#allocation2 + $0x48] sm:$0xff]  ;;  %vm689_vm6 = vcmask 523712   ;;  %vm964_vm7 = vcmask 1041409   ;;  %vm966_vm8 = vcmask 1042434  }
  0x17   :  { %68 = vadd.xlane.f32.xlu0 %v67_v7  ;;  %v70_v11 = vadd.f32 %v38_v9, %v37_v8  ;;  %v46_v13 = vld [vmem:[#allocation2 + $0x58] sm:$0xff]  ;;  %v79_v17 = vadd.f32 %v44_v15, %v43_v14  ;;  %v49_v18 = vld [vmem:[#allocation2 + $0x70] sm:$0xff]  ;;  %v47_v20 = vld [vmem:[#allocation2 + $0x60] sm:$0xff]  ;;  %v3372_v50 = vsub.s32 0, %v3369_v49  ;;  %v3379_v54 = vsub.s32 1, %v3369_v49 }
  0x18   :  { %v82_v16 = vadd.f32 %v46_v13, %v45_v12  ;;  %v50_v19 = vld [vmem:[#allocation2 + $0x78] sm:$0xff]  ;;  %v48_v21 = vld [vmem:[#allocation2 + $0x68] sm:$0xff]  ;;  %v53_v24 = vld [vmem:[#allocation2 + $0x90] sm:$0xff]  ;;  %v3383_v56 = vsub.s32 2, %v3369_v49  ;;  %v3387_v58 = vsub.s32 3, %v3369_v49  ;;  %vm968_vm9 = vcmask 1043459  }
  0x19   :  { %v88_v22 = vadd.f32 %v50_v19, %v49_v18  ;;  %v85_v23 = vadd.f32 %v48_v21, %v47_v20  ;;  %v54_v25 = vld [vmem:[#allocation2 + $0x98] sm:$0xff]  ;;  %v51_v26 = vld [vmem:[#allocation2 + $0x80] sm:$0xff]  ;;  %v52_v27 = vld [vmem:[#allocation2 + $0x88] sm:$0xff]  ;;  %vm975_vm10 = vcmask 519168   ;;  %vm2670_vm11 = vcmask 1044484  }
  0x1a   :  { %77 = vadd.xlane.f32.xlu1 %v76_v10  ;;  %v94_v28 = vadd.f32 %v54_v25, %v53_v24  ;;  %v91_v29 = vadd.f32 %v52_v27, %v51_v26  ;;  %v57_v30 = vld [vmem:[#allocation2 + $0xb0] sm:$0xff]  ;;  %v58_v31 = vld [vmem:[#allocation2 + $0xb8] sm:$0xff]  ;;  %v55_v32 = vld [vmem:[#allocation2 + $0xa0] sm:$0xff]  ;;  %vm2672_vm12 = vcmask 1045509   ;;  %vm2674_vm13 = vcmask 1046534  }
  0x1b   :  { %71 = vadd.xlane.f32.xlu0 %v70_v11  ;;  %v56_v33 = vld [vmem:[#allocation2 + $0xa8] sm:$0xff]  ;;  %v100_v34 = vadd.f32 %v58_v31, %v57_v30  ;;  %v61_v36 = vld [vmem:[#allocation2 + $0xd0] sm:$0xff]  ;;  %v62_v37 = vld [vmem:[#allocation2 + $0xd8] sm:$0xff]  ;;  %vm2676_vm14 = vcmask 1047559   ;;  %vm2799_vm15 = vcmask 31744  }
  0x1c   :  { %v97_v35 = vadd.f32 %v56_v33, %v55_v32  ;;  %v59_v38 = vld [vmem:[#allocation2 + $0xc0] sm:$0xff]  ;;  %v60_v39 = vld [vmem:[#allocation2 + $0xc8] sm:$0xff]  ;;  %v106_v40 = vadd.f32 %v62_v37, %v61_v36  ;;  %v65_v42 = vld [vmem:[#allocation2 + $0xf0] sm:$0xff] }
  0x1d   :  { %v103_v41 = vadd.f32 %v60_v39, %v59_v38  ;;  %v66_v43 = vld [vmem:[#allocation2 + $0xf8] sm:$0xff]  ;;  %v63_v44 = vld [vmem:[#allocation2 + $0xe0] sm:$0xff]  ;;  %v64_v45 = vld [vmem:[#allocation2 + $0xe8] sm:$0xff] }
  0x1e   :  { %83 = vadd.xlane.f32.xlu1 %v82_v16  ;;  %v112_v46 = vadd.f32 %v66_v43, %v65_v42  ;;  %v109_v47 = vadd.f32 %v64_v45, %v63_v44  ;;  %v132_v51 = vld [vmem:[%s4941_s1] sm:$0xf] }
  0x1f   :  { %80 = vadd.xlane.f32.xlu0 %v79_v17  ;;  %v147_v52 = vrot.slane %v132_v51, %v3372_v50  ;;  %v182_v55 = vrot.slane %v132_v51, %v3379_v54  ;;  %v217_v57 = vrot.slane %v132_v51, %v3383_v56  ;;  %v252_v59 = vrot.slane %v132_v51, %v3387_v58 }
  0x22   :  { %89 = vadd.xlane.f32.xlu1 %v88_v22 }
  0x23   :  { %86 = vadd.xlane.f32.xlu0 %v85_v23 }
  0x26   :  { %95 = vadd.xlane.f32.xlu1 %v94_v28 }
  0x27   :  { %92 = vadd.xlane.f32.xlu0 %v91_v29 }
  0x2a   :  { %101 = vadd.xlane.f32.xlu1 %v100_v34 }
  0x2b   :  { %98 = vadd.xlane.f32.xlu0 %v97_v35 }
  0x2e   :  { %107 = vadd.xlane.f32.xlu1 %v106_v40 }
  0x2f   :  { %104 = vadd.xlane.f32.xlu0 %v103_v41 }
  0x32   :  { %113 = vadd.xlane.f32.xlu1 %v112_v46 }
  0x33   :  { %110 = vadd.xlane.f32.xlu0 %v109_v47 }
  0x43   :  { %153 = vbcast.lane.b32.xlu1 %v147_v52, 264 }
  0x47   :  { %157 = vbcast.lane.b32.xlu1 %v147_v52, 272 }
  0x49   :  { %149 = vbcast.lane.b32.xlu0 %v147_v52, 256 }
  0x4b   :  { %161 = vbcast.lane.b32.xlu1 %v147_v52, 280 }
  0x4d   :  { %165 = vbcast.lane.b32.xlu0 %v147_v52, 288 }
  0x4f   :  { %169 = vbcast.lane.b32.xlu1 %v147_v52, 296 }
  0x51   :  { %173 = vbcast.lane.b32.xlu0 %v147_v52, 304 }
  0x53   :  { %177 = vbcast.lane.b32.xlu1 %v147_v52, 312 }
  0x55   :  { %184 = vbcast.lane.b32.xlu0 %v182_v55, 256 }
  0x57   :  { %188 = vbcast.lane.b32.xlu1 %v182_v55, 264 }
  0x59   :  { %192 = vbcast.lane.b32.xlu0 %v182_v55, 272 }
  0x5b   :  { %196 = vbcast.lane.b32.xlu1 %v182_v55, 280 }
  0x5d   :  { %200 = vbcast.lane.b32.xlu0 %v182_v55, 288 }
  0x5f   :  { %204 = vbcast.lane.b32.xlu1 %v182_v55, 296 }
  0x61   :  { %208 = vbcast.lane.b32.xlu0 %v182_v55, 304 }
  0x63   :  { %212 = vbcast.lane.b32.xlu1 %v182_v55, 312 }
  0x65   :  { %219 = vbcast.lane.b32.xlu0 %v217_v57, 256 }
  0x67   :  { %223 = vbcast.lane.b32.xlu1 %v217_v57, 264 }
  0x69   :  { %227 = vbcast.lane.b32.xlu0 %v217_v57, 272 }
  0x6b   :  { %231 = vbcast.lane.b32.xlu1 %v217_v57, 280 }
  0x6d   :  { %235 = vbcast.lane.b32.xlu0 %v217_v57, 288 }
  0x6f   :  { %239 = vbcast.lane.b32.xlu1 %v217_v57, 296 }
  0x71   :  { %243 = vbcast.lane.b32.xlu0 %v217_v57, 304 }
  0x73   :  { %247 = vbcast.lane.b32.xlu1 %v217_v57, 312 }
  0x75   :  { %254 = vbcast.lane.b32.xlu0 %v252_v59, 256 }
  0x77   :  { %258 = vbcast.lane.b32.xlu1 %v252_v59, 264 }
  0x79   :  { %262 = vbcast.lane.b32.xlu0 %v252_v59, 272 }
  0x7b   :  { %266 = vbcast.lane.b32.xlu1 %v252_v59, 280 }
  0x7d   :  { %270 = vbcast.lane.b32.xlu0 %v252_v59, 288 }
  0x7f   :  { %274 = vbcast.lane.b32.xlu1 %v252_v59, 296 }
  0x81   :  { %278 = vbcast.lane.b32.xlu0 %v252_v59, 304 }
  0x83   :  { %282 = vbcast.lane.b32.xlu1 %v252_v59, 312 }
  0xa3   :  { %v75_v60 = vpop.xlane.xlu1 %74 }
  0xa4   :  { %v69_v61 = vpop.xlane.xlu0 %68  ;;  %v3418_v18 = vmul.f32 0.00390625, %v75_v60 }
  0xa5   :  { %v3408_v13 = vmul.f32 0.00390625, %v69_v61 }
  0xa7   :  { %v78_v62 = vpop.xlane.xlu1 %77 }
  0xa8   :  { %v72_v63 = vpop.xlane.xlu0 %71  ;;  %v3426_v22 = vmul.f32 0.00390625, %v78_v62 }
  0xa9   :  { %v3406_v12 = vmul.f32 0.00390625, %v72_v63 }
  0xab   :  { %v84_v0 = vpop.xlane.xlu1 %83 }
  0xac   :  { %v81_v1 = vpop.xlane.xlu0 %80  ;;  %v3438_v28 = vmul.f32 0.00390625, %v84_v0 }
  0xad   :  { %v3428_v23 = vmul.f32 0.00390625, %v81_v1 }
  0xaf   :  { %v90_v2 = vpop.xlane.xlu1 %89 }
  0xb0   :  { %v87_v3 = vpop.xlane.xlu0 %86  ;;  %v3450_v34 = vmul.f32 0.00390625, %v90_v2 }
  0xb1   :  { %v3440_v29 = vmul.f32 0.00390625, %v87_v3 }
  0xb3   :  { %v3390_v4 = vpop.xlane.xlu1 %95 }
  0xb4   :  { %v3392_v5 = vpop.xlane.xlu0 %92 }
  0xb7   :  { %v3394_v6 = vpop.xlane.xlu1 %101 }
  0xb8   :  { %v3396_v7 = vpop.xlane.xlu0 %98 }
  0xbb   :  { %v3398_v8 = vpop.xlane.xlu1 %107 }
  0xbc   :  { %v3400_v9 = vpop.xlane.xlu0 %104 }
  0xbf   :  { %v3402_v10 = vpop.xlane.xlu1 %113 }
  0xc0   :  { %v3404_v11 = vpop.xlane.xlu0 %110 }
  0xc3   :  { %v3410_v14 = vpop.permute.xlu1 %153 }
  0xc4   :  { %v317_v15 = vmul.f32 %v3410_v14, %v3406_v12  ;;  %v3414_v16 = vpop.permute.xlu0 %149 }
  0xc5   :  { %v316_v17 = vmul.f32 %v3414_v16, %v3408_v13 }
  0xc6   :  { %448 = vperm.xlu1 %3173, %v317_v15  }
  0xc7   :  { %445 = vperm.xlu0 %3172, %v316_v17   ;;  %v3420_v19 = vpop.permute.xlu1 %157 }
  0xc8   :  { %v318_v20 = vmul.f32 %v3420_v19, %v3418_v18  ;;  %v3424_v21 = vpop.permute.xlu0 %165 }
  0xc9   :  { %v320_v25 = vmul.f32 %v3424_v21, %v3428_v23 }
  0xca   :  { %451 = vperm.xlu1 %3173, %v318_v20  }
  0xcb   :  { %v3430_v24 = vpop.permute.xlu1 %161 }
  0xcc   :  { %v319_v26 = vmul.f32 %v3430_v24, %v3426_v22  ;;  %v3436_v27 = vpop.permute.xlu0 %173 }
  0xcd   :  { %v322_v31 = vmul.f32 %v3436_v27, %v3440_v29 }
  0xce   :  { %454 = vperm.xlu0 %3172, %v319_v26   ;;  %457 = vperm.xlu1 %3173, %v320_v25  }
  0xcf   :  { %v3442_v30 = vpop.permute.xlu1 %169 }
  0xd0   :  { %v321_v32 = vmul.f32 %v3442_v30, %v3438_v28  ;;  %v3448_v33 = vpop.permute.xlu0 %184 }
  0xd1   :  { %v324_v36 = vmul.f32 %v3448_v33, %v3408_v13 }
  0xd2   :  { %460 = vperm.xlu0 %3172, %v321_v32   ;;  %463 = vperm.xlu1 %3173, %v322_v31  }
  0xd3   :  { %v3452_v35 = vpop.permute.xlu1 %177 }
  0xd4   :  { %v323_v37 = vmul.f32 %v3452_v35, %v3450_v34  ;;  %v3458_v38 = vpop.permute.xlu0 %192 }
  0xd5   :  { %v326_v40 = vmul.f32 %v3458_v38, %v3418_v18 }
  0xd6   :  { %466 = vperm.xlu0 %3172, %v323_v37   ;;  %469 = vperm.xlu1 %3173, %v324_v36  }
  0xd7   :  { %v3460_v39 = vpop.permute.xlu1 %188 }
  0xd8   :  { %v325_v41 = vmul.f32 %v3460_v39, %v3406_v12  ;;  %v3466_v42 = vpop.permute.xlu0 %200 }
  0xd9   :  { %v328_v44 = vmul.f32 %v3466_v42, %v3428_v23 }
  0xda   :  { %472 = vperm.xlu0 %3172, %v325_v41   ;;  %475 = vperm.xlu1 %3173, %v326_v40  }
  0xdb   :  { %v3468_v43 = vpop.permute.xlu1 %196 }
  0xdc   :  { %v327_v45 = vmul.f32 %v3468_v43, %v3426_v22  ;;  %v3474_v46 = vpop.permute.xlu0 %208 }
  0xdd   :  { %v330_v51 = vmul.f32 %v3474_v46, %v3440_v29 }
  0xde   :  { %478 = vperm.xlu0 %3172, %v327_v45   ;;  %481 = vperm.xlu1 %3173, %v328_v44  }
  0xdf   :  { %v3476_v47 = vpop.permute.xlu1 %204 }
  0xe0   :  { %v329_v52 = vmul.f32 %v3476_v47, %v3438_v28  ;;  %v3482_v53 = vpop.permute.xlu0 %219 }
  0xe1   :  { %v332_v57 = vmul.f32 %v3482_v53, %v3408_v13 }
  0xe2   :  { %484 = vperm.xlu0 %3172, %v329_v52   ;;  %487 = vperm.xlu1 %3173, %v330_v51  }
  0xe3   :  { %v3484_v55 = vpop.permute.xlu1 %212 }
  0xe4   :  { %v331_v59 = vmul.f32 %v3484_v55, %v3450_v34  ;;  %v3490_v60 = vpop.permute.xlu0 %227 }
  0xe5   :  { %v334_v62 = vmul.f32 %v3490_v60, %v3418_v18 }
  0xe6   :  { %490 = vperm.xlu0 %3172, %v331_v59   ;;  %493 = vperm.xlu1 %3173, %v332_v57  }
  0xe7   :  { %v3492_v61 = vpop.permute.xlu1 %223 }
  0xe8   :  { %v333_v63 = vmul.f32 %v3492_v61, %v3406_v12  ;;  %v3498_v0 = vpop.permute.xlu0 %235 }
  0xe9   :  { %v336_v2 = vmul.f32 %v3498_v0, %v3428_v23 }
  0xea   :  { %496 = vperm.xlu0 %3172, %v333_v63   ;;  %499 = vperm.xlu1 %3173, %v334_v62   ;;  %v124_v62 = vmul.f32 0.00390625, %v3392_v5  ;;  %v127_v5 = vmul.f32 0.00390625, %v3394_v6  ;;  %v131_v6 = vmul.f32 0.00390625, %v3402_v10 }
  0xeb   :  { %v3500_v1 = vpop.permute.xlu1 %231 }
  0xec   :  { %v335_v3 = vmul.f32 %v3500_v1, %v3426_v22  ;;  %v3506_v15 = vpop.permute.xlu0 %243 }
  0xed   :  { %v338_v20 = vmul.f32 %v3506_v15, %v3440_v29 }
  0xee   :  { %502 = vperm.xlu0 %3172, %v335_v3   ;;  %505 = vperm.xlu1 %3173, %v336_v2   ;;  %v125_v2 = vmul.f32 0.00390625, %v3390_v4  ;;  %v126_v3 = vmul.f32 0.00390625, %v3396_v7  ;;  %v129_v4 = vmul.f32 0.00390625, %v3398_v8  ;;  %v130_v7 = vmul.f32 0.00390625, %v3404_v11 }
  0xef   :  { %v3508_v17 = vpop.permute.xlu1 %239 }
  0xf0   :  { %v337_v25 = vmul.f32 %v3508_v17, %v3438_v28  ;;  %v3514_v26 = vpop.permute.xlu0 %254  ;;  %v358_v8 = vmul.f32 %v3458_v38, %v126_v3  ;;  %v357_v11 = vmul.f32 %v3460_v39, %v125_v2  ;;  %v362_v10 = vmul.f32 %v3474_v46, %v130_v7 }
  0xf1   :  { %v340_v32 = vmul.f32 %v3514_v26, %v3408_v13  ;;  %v366_v38 = vmul.f32 %v3490_v60, %v126_v3  ;;  %v365_v39 = vmul.f32 %v3492_v61, %v125_v2  ;;  %v370_v46 = vmul.f32 %v3506_v15, %v130_v7  ;;  %v3590_v15 = vld [vmem:[%s4943_s3] sm:$0xff] }
  0xf2   :  { %508 = vperm.xlu0 %3172, %v337_v25   ;;  %511 = vperm.xlu1 %3173, %v338_v20   ;;  %v128_v20 = vmul.f32 0.00390625, %v3400_v9  ;;  %v356_v9 = vmul.f32 %v3448_v33, %v124_v62  ;;  %v364_v33 = vmul.f32 %v3482_v53, %v124_v62  ;;  %v372_v53 = vmul.f32 %v3514_v26, %v124_v62 }
  0xf3   :  { %v3516_v31 = vpop.permute.xlu1 %247  ;;  %v1006_v26 = vrot.slane %v3590_v15, %v3372_v50 }
  0xf4   :  { %v339_v36 = vmul.f32 %v3516_v31, %v3450_v34  ;;  %v3522_v37 = vpop.permute.xlu0 %262 }
  0xf5   :  { %v342_v41 = vmul.f32 %v3522_v37, %v3418_v18  ;;  %v374_v60 = vmul.f32 %v3522_v37, %v126_v3  ;;  %v3165_v37 = vld [vmem:[%s4942_s2] ss:$0 sm:$0xff] }
  0xf6   :  { %514 = vperm.xlu0 %3172, %v339_v36   ;;  %517 = vperm.xlu1 %3173, %v340_v32   ;;  %v1013_v36 = vrot.slane %v3590_v15, %v3379_v54 }
  0xf7   :  { %v3524_v40 = vpop.permute.xlu1 %258 }
  0xf8   :  { %v341_v44 = vmul.f32 %v3524_v40, %v3406_v12  ;;  %v3530_v45 = vpop.permute.xlu0 %270  ;;  %v373_v61 = vmul.f32 %v3524_v40, %v125_v2 }
  0xf9   :  { %v344_v51 = vmul.f32 %v3530_v45, %v3428_v23 }
  0xfa   :  { %520 = vperm.xlu0 %3172, %v341_v44   ;;  %523 = vperm.xlu1 %3173, %v342_v41   ;;  %v1020_v44 = vrot.slane %v3590_v15, %v3383_v56 }
  0xfb   :  { %v3532_v13 = vpop.permute.xlu1 %266 }
  0xfc   :  { %v343_v52 = vmul.f32 %v3532_v13, %v3426_v22  ;;  %v3538_v57 = vpop.permute.xlu0 %278  ;;  %v348_v22 = vmul.f32 %v3414_v16, %v124_v62  ;;  %v352_v16 = vmul.f32 %v3424_v21, %v128_v20  ;;  %v355_v21 = vmul.f32 %v3452_v35, %v131_v6 }
  0xfd   :  { %v346_v12 = vmul.f32 %v3538_v57, %v3440_v29  ;;  %v349_v29 = vmul.f32 %v3410_v14, %v125_v2  ;;  %v354_v14 = vmul.f32 %v3436_v27, %v130_v7  ;;  %v359_v27 = vmul.f32 %v3468_v43, %v127_v5 }
  0xfe   :  { %526 = vperm.xlu0 %3172, %v343_v52   ;;  %529 = vperm.xlu1 %3173, %v344_v51   ;;  %v363_v35 = vmul.f32 %v3484_v55, %v131_v6  ;;  %v367_v43 = vmul.f32 %v3500_v1, %v127_v5  ;;  %v371_v55 = vmul.f32 %v3516_v31, %v131_v6 }
  0xff   :  { %v3540_v18 = vpop.permute.xlu1 %274  ;;  %v375_v1 = vmul.f32 %v3532_v13, %v127_v5 }
 0x100   :  { %v345_v59 = vmul.f32 %v3540_v18, %v3438_v28  ;;  %v350_v28 = vmul.f32 %v3420_v19, %v126_v3  ;;  %v353_v19 = vmul.f32 %v3442_v30, %v129_v4  ;;  %v361_v30 = vmul.f32 %v3476_v47, %v129_v4 }
 0x101   :  { %v369_v47 = vmul.f32 %v3508_v17, %v129_v4  ;;  %v378_v17 = vmul.f32 %v3538_v57, %v130_v7  ;;  %v377_v25 = vmul.f32 %v3540_v18, %v129_v4 }
 0x102   :  { %532 = vperm.xlu0 %3172, %v345_v59   ;;  %535 = vperm.xlu1 %3173, %v346_v12  }
 0x103   :  { %v3547_v23 = vpop.permute.xlu1 %282 }
 0x104   :  { %v347_v63 = vmul.f32 %v3547_v23, %v3450_v34  ;;  %v351_v34 = vmul.f32 %v3430_v24, %v127_v5  ;;  %v360_v24 = vmul.f32 %v3466_v42, %v128_v20  ;;  %v368_v42 = vmul.f32 %v3498_v0, %v128_v20 }
 0x105   :  { %v376_v0 = vmul.f32 %v3530_v45, %v128_v20  ;;  %v379_v31 = vmul.f32 %v3547_v23, %v131_v6 }
 0x106   :  { %538 = vperm.xlu0 %3172, %v347_v63   ;;  %541 = vperm.xlu1 %3173, %v348_v22  }
 0x10a   :  { %544 = vperm.xlu0 %3172, %v349_v29   ;;  %547 = vperm.xlu1 %3173, %v350_v28   ;;  %v637_v29 = vand.u32 127, %v144_v48 }
 0x10c   :  { %v642_v20 = vadd.s32 4294967288, %v637_v29  ;;  %v649_v4 = vadd.s32 4294967280, %v637_v29  ;;  %v663_v7 = vadd.s32 4294967264, %v637_v29  ;;  %v3639_v48 = vsub.s32 %v637_v29, %v3369_v49 }
 0x10e   :  { %550 = vperm.xlu0 %3172, %v351_v34   ;;  %553 = vperm.xlu1 %3173, %v352_v16  }
 0x112   :  { %556 = vperm.xlu0 %3172, %v353_v19   ;;  %559 = vperm.xlu1 %3173, %v354_v14   ;;  %v3632_v14 = vsub.s32 %v642_v20, %v3369_v49  ;;  %v656_v19 = vadd.s32 4294967272, %v637_v29 }
 0x116   :  { %562 = vperm.xlu0 %3172, %v355_v21   ;;  %565 = vperm.xlu1 %3173, %v356_v9   ;;  %v677_v21 = vadd.s32 4294967248, %v637_v29 }
 0x11a   :  { %568 = vperm.xlu0 %3172, %v357_v11   ;;  %571 = vperm.xlu1 %3173, %v358_v8   ;;  %v670_v8 = vadd.s32 4294967256, %v637_v29 }
 0x11e   :  { %574 = vperm.xlu0 %3172, %v359_v27   ;;  %577 = vperm.xlu1 %3173, %v360_v24   ;;  %v3643_v24 = vsub.s32 %v649_v4, %v3369_v49  ;;  %v3646_v27 = vsub.s32 %v663_v7, %v3369_v49 }
 0x122   :  { %580 = vperm.xlu0 %3172, %v361_v30   ;;  %583 = vperm.xlu1 %3173, %v362_v10   ;;  %v3649_v10 = vsub.s32 %v656_v19, %v3369_v49 }
 0x126   :  { %586 = vperm.xlu0 %3172, %v363_v35   ;;  %589 = vperm.xlu1 %3173, %v364_v33  }
 0x12a   :  { %592 = vperm.xlu0 %3172, %v365_v39   ;;  %595 = vperm.xlu1 %3173, %v366_v38   ;;  %v3656_v39 = vsub.s32 %v677_v21, %v3369_v49 }
 0x12e   :  { %598 = vperm.xlu0 %3172, %v367_v43   ;;  %601 = vperm.xlu1 %3173, %v368_v42   ;;  %v3659_v42 = vsub.s32 %v670_v8, %v3369_v49 }
 0x132   :  { %604 = vperm.xlu0 %3172, %v369_v47   ;;  %607 = vperm.xlu1 %3173, %v370_v46   ;;  %v684_v46 = vadd.s32 4294967240, %v637_v29 }
 0x136   :  { %610 = vperm.xlu0 %3172, %v371_v55   ;;  %613 = vperm.xlu1 %3173, %v372_v53  }
 0x13a   :  { %616 = vperm.xlu0 %3172, %v373_v61   ;;  %619 = vperm.xlu1 %3173, %v374_v60  }
 0x13e   :  { %622 = vperm.xlu0 %3172, %v375_v1   ;;  %625 = vperm.xlu1 %3173, %v376_v0  }
 0x142   :  { %628 = vperm.xlu0 %3172, %v377_v25   ;;  %631 = vperm.xlu1 %3173, %v378_v17  }
 0x145   :  { %v3597_v32 = vpop.permute.xlu1 %448 }
 0x146   :  { %634 = vperm.xlu0 %3172, %v379_v31   ;;  %1008 = vbcast.lane.b32.xlu1 %v1006_v26, 256  ;;  %v3604_v40 = vpop.permute.xlu0 %445  ;;  %v646_v60 = vrot.slane %v3597_v32, %v3632_v14 }
 0x147   :  { %v641_v61 = vrot.slane %v3604_v40, %v3639_v48 }
 0x149   :  { %v3606_v41 = vpop.permute.xlu1 %451 }
 0x14a   :  { %1015 = vbcast.lane.b32.xlu1 %v1013_v36, 256  ;;  %988 = vbcast.lane.b32.xlu0 %v3165_v37, 256  ;;  %v653_v1 = vrot.slane %v3606_v41, %v3643_v24  ;;  %v3682_v41 = vsub.s32 %v684_v46, %v3369_v49 }
 0x14d   :  { %v3610_v45 = vpop.permute.xlu1 %457  ;;  %v3612_v13 = vpop.permute.xlu0 %454 }
 0x14e   :  { %1022 = vbcast.lane.b32.xlu0 %v1020_v44, 256  ;;  %v660_v17 = vrot.slane %v3612_v13, %v3649_v10 }
 0x151   :  { %v3614_v51 = vpop.permute.xlu1 %463  ;;  %v3616_v52 = vpop.permute.xlu0 %460 }
 0x155   :  { %v470_v57 = vpop.permute.xlu1 %469  ;;  %v3618_v18 = vpop.permute.xlu0 %466 }
 0x156   :  { %v694_v30 = vrot.slane %v470_v57, %v3639_v48 }
 0x159   :  { %v476_v12 = vpop.permute.xlu1 %475  ;;  %v473_v59 = vpop.permute.xlu0 %472 }
 0x15a   :  { %v698_v11 = vrot.slane %v473_v59, %v3632_v14  ;;  %v703_v43 = vrot.slane %v476_v12, %v3643_v24  ;;  %v648_v59 = vsel %vm647_vm0, %v646_v60, %v641_v61 }
 0x15b   :  { %v655_v29 = vsel %vm654_vm1, %v653_v1, %v648_v59 }
 0x15c   :  { %v699_v47 = vsel %vm647_vm0, %v698_v11, %v694_v30  ;;  %v662_v4 = vsel %vm661_vm2, %v660_v17, %v655_v29 }
 0x15d   :  { %v3620_v62 = vpop.permute.xlu1 %481  ;;  %v479_v23 = vpop.permute.xlu0 %478  ;;  %v704_v37 = vsel %vm654_vm1, %v703_v43, %v699_v47 }
 0x15e   :  { %v708_v53 = vrot.slane %v479_v23, %v3649_v10  ;;  %v713_v32 = vrot.slane %v3620_v62, %v3646_v27 }
 0x160   :  { %v709_v13 = vsel %vm661_vm2, %v708_v53, %v704_v37 }
 0x161   :  { %v3622_v22 = vpop.permute.xlu1 %487  ;;  %v3624_v63 = vpop.permute.xlu0 %484  ;;  %v714_v7 = vsel %vm668_vm3, %v713_v32, %v709_v13 }
 0x162   :  { %v718_v57 = vrot.slane %v3624_v63, %v3659_v42  ;;  %v723_v21 = vrot.slane %v3622_v22, %v3656_v39 }
 0x165   :  { %v494_v2 = vpop.permute.xlu1 %493  ;;  %v3626_v3 = vpop.permute.xlu0 %490 }
 0x166   :  { %v733_v55 = vrot.slane %v494_v2, %v3639_v48  ;;  %v728_v11 = vrot.slane %v3626_v3, %v3682_v41 }
 0x169   :  { %v500_v28 = vpop.permute.xlu1 %499  ;;  %v497_v5 = vpop.permute.xlu0 %496 }
 0x16a   :  { %v737_v33 = vrot.slane %v497_v5, %v3632_v14  ;;  %v742_v0 = vrot.slane %v500_v28, %v3643_v24  ;;  %v667_v28 = vrot.slane %v3610_v45, %v3646_v27  ;;  %v719_v45 = vsel %vm675_vm4, %v718_v57, %v714_v7 }
 0x16b   :  { %v3763_v7 = vsub.s32 7, %v3369_v49 }
 0x16c   :  { %v738_v25 = vsel %vm647_vm0, %v737_v33, %v733_v55  ;;  %v669_v22 = vsel %vm668_vm3, %v667_v28, %v662_v4 }
 0x16d   :  { %v3629_v16 = vpop.permute.xlu1 %505  ;;  %v503_v34 = vpop.permute.xlu0 %502  ;;  %v743_v23 = vsel %vm654_vm1, %v742_v0, %v738_v25 }
 0x16e   :  { %v747_v26 = vrot.slane %v503_v34, %v3649_v10  ;;  %v752_v62 = vrot.slane %v3629_v16, %v3646_v27  ;;  %v674_v16 = vrot.slane %v3616_v52, %v3659_v42 }
 0x170   :  { %v748_v5 = vsel %vm661_vm2, %v747_v26, %v743_v23  ;;  %v676_v3 = vsel %vm675_vm4, %v674_v16, %v669_v22 }
 0x171   :  { %v3634_v6 = vpop.permute.xlu1 %511  ;;  %v3636_v9 = vpop.permute.xlu0 %508  ;;  %v753_v52 = vsel %vm668_vm3, %v752_v62, %v748_v5 }
 0x172   :  { %v757_v63 = vrot.slane %v3636_v9, %v3659_v42  ;;  %v762_v30 = vrot.slane %v3634_v6, %v3656_v39  ;;  %v688_v6 = vrot.slane %v3618_v18, %v3682_v41 }
 0x174   :  { %v758_v43 = vsel %vm675_vm4, %v757_v63, %v753_v52  ;;  %v1027_v63 = vrot.slane %v3590_v15, %v3387_v58 }
 0x175   :  { %v518_v35 = vpop.permute.xlu1 %517  ;;  %v3653_v38 = vpop.permute.xlu0 %514 }
 0x176   :  { %v772_v40 = vrot.slane %v518_v35, %v3639_v48  ;;  %v681_v35 = vrot.slane %v3614_v51, %v3656_v39  ;;  %v767_v46 = vrot.slane %v3653_v38, %v3682_v41  ;;  %v724_v51 = vsel %vm682_vm5, %v723_v21, %v719_v45 }
 0x177   :  { %v729_v0 = vsel %vm689_vm6, %v728_v11, %v724_v51  ;;  %v763_v38 = vsel %vm682_vm5, %v762_v30, %v758_v43  ;;  %v1055_v45 = vrot.slane %v3590_v15, %v3763_v7  ;;  %v3776_v11 = vld [vmem:[%s4943_s3 + $0x8] sm:$0xff]  ;;  %v3793_v51 = vld [vmem:[%s4943_s3 + $0x10] sm:$0xff] }
 0x178   :  { %v683_v17 = vsel %vm682_vm5, %v681_v35, %v676_v3  ;;  %v768_v18 = vsel %vm689_vm6, %v767_v46, %v763_v38  ;;  %v1069_v30 = vrot.slane %v3776_v11, %v3379_v54  ;;  %v1083_v35 = vrot.slane %v3776_v11, %v3387_v58 }
 0x179   :  { %v524_v31 = vpop.permute.xlu1 %523  ;;  %v521_v36 = vpop.permute.xlu0 %520  ;;  %v1111_v3 = vrot.slane %v3776_v11, %v3763_v7 }
 0x17a   :  { %v776_v44 = vrot.slane %v521_v36, %v3632_v14  ;;  %v781_v12 = vrot.slane %v524_v31, %v3643_v24  ;;  %v690_v31 = vsel %vm689_vm6, %v688_v6, %v683_v17 }
 0x17b   :  { %v965_v37 = vsel %vm964_vm7, %v729_v0, %v690_v31 }
 0x17c   :  { %v777_v2 = vsel %vm647_vm0, %v776_v44, %v772_v40  ;;  %v967_v44 = vsel %vm966_vm8, %v768_v18, %v965_v37 }
 0x17d   :  { %v530_v20 = vpop.permute.xlu1 %529  ;;  %v527_v34 = vpop.permute.xlu0 %526  ;;  %v782_v9 = vsel %vm654_vm1, %v781_v12, %v777_v2 }
 0x17e   :  { %v786_v19 = vrot.slane %v527_v34, %v3649_v10  ;;  %v791_v8 = vrot.slane %v530_v20, %v3646_v27  ;;  %v3758_v20 = vsub.s32 5, %v3369_v49 }
 0x180   :  { %v787_v33 = vsel %vm661_vm2, %v786_v19, %v782_v9  ;;  %v1041_v16 = vrot.slane %v3590_v15, %v3758_v20  ;;  %v1097_v46 = vrot.slane %v3776_v11, %v3758_v20 }
 0x181   :  { %v536_v47 = vpop.permute.xlu1 %535  ;;  %v533_v53 = vpop.permute.xlu0 %532  ;;  %v792_v61 = vsel %vm668_vm3, %v791_v8, %v787_v33 }
 0x182   :  { %v796_v55 = vrot.slane %v533_v53, %v3659_v42  ;;  %v801_v60 = vrot.slane %v536_v47, %v3656_v39 }
 0x184   :  { %v797_v1 = vsel %vm675_vm4, %v796_v55, %v792_v61  ;;  %v1125_v61 = vrot.slane %v3793_v51, %v3379_v54 }
 0x185   :  { %v3733_v25 = vpop.permute.xlu1 %541  ;;  %v539_v26 = vpop.permute.xlu0 %538  ;;  %v802_v32 = vsel %vm682_vm5, %v801_v60, %v797_v1 }
 0x186   :  { %v806_v36 = vrot.slane %v539_v26, %v3682_v41  ;;  %v811_v31 = vrot.slane %v3733_v25, %v3639_v48 }
 0x188   :  { %v807_v40 = vsel %vm689_vm6, %v806_v36, %v802_v32 }
 0x189   :  { %v3741_v13 = vpop.permute.xlu1 %547  ;;  %v545_v57 = vpop.permute.xlu0 %544  ;;  %v969_v12 = vsel %vm968_vm9, %v807_v40, %v967_v44 }
 0x18a   :  { %v976_v59 = vsel %vm975_vm10, %v969_v12, 0.0  ;;  %v815_v0 = vrot.slane %v545_v57, %v3632_v14  ;;  %v820_v40 = vrot.slane %v3741_v13, %v3643_v24  ;;  %v1139_v57 = vrot.slane %v3793_v51, %v3387_v58 }
 0x18b   :  { %977 = vadd.xlane.f32.xlu1 %v976_v59 }
 0x18c   :  { %v816_v12 = vsel %vm647_vm0, %v815_v0, %v811_v31 }
 0x18d   :  { %v3745_v62 = vpop.permute.xlu1 %553  ;;  %v3747_v23 = vpop.permute.xlu0 %550 }
 0x18e   :  { %v825_v25 = vrot.slane %v3747_v23, %v3649_v10 }
 0x191   :  { %v3749_v2 = vpop.permute.xlu1 %559  ;;  %v3751_v29 = vpop.permute.xlu0 %556 }
 0x195   :  { %v566_v28 = vpop.permute.xlu1 %565  ;;  %v3753_v5 = vpop.permute.xlu0 %562 }
 0x196   :  { %v850_v38 = vrot.slane %v566_v28, %v3639_v48 }
 0x199   :  { %v572_v34 = vpop.permute.xlu1 %571  ;;  %v569_v4 = vpop.permute.xlu0 %568 }
 0x19a   :  { %v854_v60 = vrot.slane %v569_v4, %v3632_v14  ;;  %v859_v26 = vrot.slane %v572_v34, %v3643_v24 }
 0x19c   :  { %1029 = vbcast.lane.b32.xlu1 %v1027_v63, 256  ;;  %v855_v36 = vsel %vm647_vm0, %v854_v60, %v850_v38  ;;  %v835_v60 = vrot.slane %v3751_v29, %v3659_v42 }
 0x19d   :  { %v3765_v19 = vpop.permute.xlu1 %577  ;;  %v575_v21 = vpop.permute.xlu0 %574  ;;  %v860_v4 = vsel %vm654_vm1, %v859_v26, %v855_v36 }
 0x19e   :  { %v864_v32 = vrot.slane %v575_v21, %v3649_v10  ;;  %v869_v13 = vrot.slane %v3765_v19, %v3646_v27 }
 0x1a0   :  { %1043 = vbcast.lane.b32.xlu1 %v1041_v16, 256 }
 0x1a1   :  { %v3769_v8 = vpop.permute.xlu1 %583  ;;  %v3771_v9 = vpop.permute.xlu0 %580 }
 0x1a2   :  { %v874_v23 = vrot.slane %v3771_v9, %v3659_v42  ;;  %v821_v9 = vsel %vm654_vm1, %v820_v40, %v816_v12  ;;  %v845_v40 = vrot.slane %v3753_v5, %v3682_v41 }
 0x1a4   :  { %1057 = vbcast.lane.b32.xlu1 %v1055_v45, 256  ;;  %v865_v45 = vsel %vm661_vm2, %v864_v32, %v860_v4 }
 0x1a5   :  { %v590_v52 = vpop.permute.xlu1 %589  ;;  %v3780_v33 = vpop.permute.xlu0 %586 }
 0x1a6   :  { %v889_v37 = vrot.slane %v590_v52, %v3639_v48  ;;  %v1153_v52 = vrot.slane %v3793_v51, %v3758_v20 }
 0x1a8   :  { %1071 = vbcast.lane.b32.xlu1 %v1069_v30, 256 }
 0x1a9   :  { %v596_v22 = vpop.permute.xlu1 %595  ;;  %v593_v43 = vpop.permute.xlu0 %592 }
 0x1aa   :  { %v893_v1 = vrot.slane %v593_v43, %v3632_v14  ;;  %v898_v44 = vrot.slane %v596_v22, %v3643_v24  ;;  %v830_v43 = vrot.slane %v3745_v62, %v3646_v27  ;;  %v879_v62 = vrot.slane %v3769_v8, %v3656_v39 }
 0x1ac   :  { %1085 = vbcast.lane.b32.xlu1 %v1083_v35, 256  ;;  %v894_v59 = vsel %vm647_vm0, %v893_v1, %v889_v37 }
 0x1ad   :  { %v602_v47 = vpop.permute.xlu1 %601  ;;  %v599_v53 = vpop.permute.xlu0 %598  ;;  %v899_v19 = vsel %vm654_vm1, %v898_v44, %v894_v59 }
 0x1ae   :  { %v903_v28 = vrot.slane %v599_v53, %v3649_v10  ;;  %v908_v35 = vrot.slane %v602_v47, %v3646_v27  ;;  %v826_v47 = vsel %vm661_vm2, %v825_v25, %v821_v9 }
 0x1af   :  { %v831_v8 = vsel %vm668_vm3, %v830_v43, %v826_v47 }
 0x1b0   :  { %1099 = vbcast.lane.b32.xlu1 %v1097_v46, 256  ;;  %v836_v37 = vsel %vm675_vm4, %v835_v60, %v831_v8 }
 0x1b1   :  { %v3788_v6 = vpop.permute.xlu1 %607  ;;  %v605_v55 = vpop.permute.xlu0 %604 }
 0x1b2   :  { %v913_v46 = vrot.slane %v605_v55, %v3659_v42  ;;  %v918_v26 = vrot.slane %v3788_v6, %v3656_v39  ;;  %v3865_v6 = vld [vmem:[%s4943_s3 + $0x18] sm:$0xff] }
 0x1b4   :  { %1113 = vbcast.lane.b32.xlu1 %v1111_v3, 256 }
 0x1b5   :  { %v614_v17 = vpop.permute.xlu1 %613  ;;  %v3801_v18 = vpop.permute.xlu0 %610 }
 0x1b6   :  { %v928_v16 = vrot.slane %v614_v17, %v3639_v48  ;;  %v884_v17 = vrot.slane %v3780_v33, %v3682_v41  ;;  %v923_v36 = vrot.slane %v3801_v18, %v3682_v41 }
 0x1b8   :  { %1127 = vbcast.lane.b32.xlu1 %v1125_v61, 256  ;;  %v870_v61 = vsel %vm668_vm3, %v869_v13, %v865_v45  ;;  %v1195_v45 = vrot.slane %v3865_v6, %v3387_v58 }
 0x1b9   :  { %v620_v63 = vpop.permute.xlu1 %619  ;;  %v617_v34 = vpop.permute.xlu0 %616  ;;  %v875_v38 = vsel %vm675_vm4, %v874_v23, %v870_v61 }
 0x1ba   :  { %v932_v21 = vrot.slane %v617_v34, %v3632_v14  ;;  %v937_v30 = vrot.slane %v620_v63, %v3643_v24  ;;  %v1167_v14 = vrot.slane %v3793_v51, %v3763_v7  ;;  %v904_v24 = vsel %vm661_vm2, %v903_v28, %v899_v19 }
 0x1bb   :  { %v909_v29 = vsel %vm668_vm3, %v908_v35, %v904_v24  ;;  %v880_v44 = vsel %vm682_vm5, %v879_v62, %v875_v38  ;;  %v1181_v28 = vrot.slane %v3865_v6, %v3379_v54  ;;  %v3898_v35 = vld [vmem:[%s4943_s3 + $0x20] sm:$0xff]  ;;  %v3912_v24 = vsub.s32 6, %v3369_v49 }
 0x1bc   :  { %v933_v22 = vsel %vm647_vm0, %v932_v21, %v928_v16  ;;  %1141 = vbcast.lane.b32.xlu1 %v1139_v57, 256  ;;  %v885_v12 = vsel %vm689_vm6, %v884_v17, %v880_v44  ;;  %v1237_v19 = vrot.slane %v3898_v35, %v3379_v54  ;;  %v1265_v43 = vrot.slane %v3898_v35, %v3758_v20 }
 0x1bd   :  { %v626_v53 = vpop.permute.xlu1 %625  ;;  %v623_v3 = vpop.permute.xlu0 %622  ;;  %v938_v55 = vsel %vm654_vm1, %v937_v30, %v933_v22  ;;  %v1251_v22 = vrot.slane %v3898_v35, %v3387_v58  ;;  %v1104_v38 = vrot.slane %v3776_v11, %v3912_v24  ;;  %v1118_v17 = vrot.slane %v3793_v51, %v3372_v50 }
 0x1be   :  { %v942_v0 = vrot.slane %v623_v3, %v3649_v10  ;;  %v947_v1 = vrot.slane %v626_v53, %v3646_v27  ;;  %v840_v10 = vrot.slane %v3749_v2, %v3656_v39  ;;  %v914_v27 = vsel %vm675_vm4, %v913_v46, %v909_v29  ;;  %v3921_v3 = vld [vmem:[%s4943_s3 + $0x28] sm:$0xff] }
 0x1bf   :  { %v919_v25 = vsel %vm682_vm5, %v918_v26, %v914_v27  ;;  %v1279_v46 = vrot.slane %v3898_v35, %v3763_v7  ;;  %v1048_v53 = vrot.slane %v3590_v15, %v3912_v24  ;;  %v1293_v47 = vrot.slane %v3921_v3, %v3379_v54  ;;  %v3963_v27 = vld [vmem:[%s4943_s3 + $0x38] sm:$0xff] }
 0x1c0   :  { %v943_v31 = vsel %vm661_vm2, %v942_v0, %v938_v55  ;;  %1155 = vbcast.lane.b32.xlu1 %v1153_v52, 256  ;;  %v841_v5 = vsel %vm682_vm5, %v840_v10, %v836_v37  ;;  %v1223_v52 = vrot.slane %v3865_v6, %v3763_v7  ;;  %v1307_v60 = vrot.slane %v3921_v3, %v3387_v58 }
 0x1c1   :  { %v632_v32 = vpop.permute.xlu1 %631  ;;  %v629_v33 = vpop.permute.xlu0 %628  ;;  %v948_v18 = vsel %vm668_vm3, %v947_v1, %v943_v31  ;;  %v846_v34 = vsel %vm689_vm6, %v845_v40, %v841_v5  ;;  %v1321_v61 = vrot.slane %v3921_v3, %v3758_v20  ;;  %v1335_v62 = vrot.slane %v3921_v3, %v3763_v7  ;;  %v3942_v1 = vld [vmem:[%s4943_s3 + $0x30] sm:$0xff] }
 0x1c2   :  { %v952_v2 = vrot.slane %v629_v33, %v3659_v42  ;;  %v957_v57 = vrot.slane %v632_v32, %v3656_v39  ;;  %v924_v42 = vsel %vm689_vm6, %v923_v36, %v919_v25  ;;  %v970_v4 = vsel %vm964_vm7, %v885_v12, %v846_v34 }
 0x1c3   :  { %v971_v21 = vsel %vm966_vm8, %v924_v42, %v970_v4  ;;  %v1349_v55 = vrot.slane %v3942_v1, %v3379_v54  ;;  %v1363_v26 = vrot.slane %v3942_v1, %v3387_v58  ;;  %v1377_v29 = vrot.slane %v3942_v1, %v3758_v20 }
 0x1c4   :  { %v953_v59 = vsel %vm675_vm4, %v952_v2, %v948_v18  ;;  %1169 = vbcast.lane.b32.xlu1 %v1167_v14, 256  ;;  %v3905_v14 = vsub.s32 4, %v3369_v49  ;;  %v1062_v49 = vrot.slane %v3776_v11, %v3372_v50  ;;  %v1391_v10 = vrot.slane %v3942_v1, %v3763_v7 }
 0x1c5   :  { %v635_v63 = vpop.permute.xlu0 %634  ;;  %v958_v13 = vsel %vm682_vm5, %v957_v57, %v953_v59  ;;  %v1160_v8 = vrot.slane %v3793_v51, %v3912_v24  ;;  %v1405_v36 = vrot.slane %v3963_v27, %v3379_v54  ;;  %v1174_v32 = vrot.slane %v3865_v6, %v3372_v50  ;;  %v3977_v40 = vpop.permute.xlu1 %1008 }
 0x1c6   :  { %v962_v39 = vrot.slane %v635_v63, %v3682_v41  ;;  %v1209_v41 = vrot.slane %v3865_v6, %v3758_v20  ;;  %v1034_v9 = vrot.slane %v3590_v15, %v3905_v14  ;;  %v1076_v15 = vrot.slane %v3776_v11, %v3383_v56 }
 0x1c7   :  { %v1090_v0 = vrot.slane %v3776_v11, %v3905_v14  ;;  %v1132_v11 = vrot.slane %v3793_v51, %v3383_v56  ;;  %v1146_v31 = vrot.slane %v3793_v51, %v3905_v14  ;;  %v1419_v33 = vrot.slane %v3963_v27, %v3387_v58 }
 0x1c8   :  { %v963_v16 = vsel %vm689_vm6, %v962_v39, %v958_v13  ;;  %1183 = vbcast.lane.b32.xlu1 %v1181_v28, 256  ;;  %v1188_v51 = vrot.slane %v3865_v6, %v3383_v56  ;;  %v1433_v37 = vrot.slane %v3963_v27, %v3758_v20  ;;  %v1202_v54 = vrot.slane %v3865_v6, %v3905_v14 }
 0x1c9   :  { %v972_v23 = vsel %vm968_vm9, %v963_v16, %v971_v21  ;;  %v1447_v2 = vrot.slane %v3963_v27, %v3763_v7  ;;  %v1216_v58 = vrot.slane %v3865_v6, %v3912_v24  ;;  %v3983_v44 = vpop.permute.xlu1 %1015  ;;  %v1230_v20 = vrot.slane %v3898_v35, %v3372_v50  ;;  %v3987_v57 = vpop.permute.xlu0 %988 }
 0x1ca   :  { %v979_v30 = vsel %vm975_vm10, %v972_v23, 0.0  ;;  %v1244_v7 = vrot.slane %v3898_v35, %v3383_v56  ;;  %v1258_v28 = vrot.slane %v3898_v35, %v3905_v14  ;;  %v1272_v63 = vrot.slane %v3898_v35, %v3912_v24 }
 0x1cb   :  { %980 = vadd.xlane.f32.xlu0 %v979_v30  ;;  %v1286_v13 = vrot.slane %v3921_v3, %v3372_v50  ;;  %v1300_v21 = vrot.slane %v3921_v3, %v3383_v56  ;;  %v1314_v30 = vrot.slane %v3921_v3, %v3905_v14  ;;  %v1328_v35 = vrot.slane %v3921_v3, %v3912_v24 }
 0x1cc   :  { %1197 = vbcast.lane.b32.xlu1 %v1195_v45, 256 }
 0x1d0   :  { %1211 = vbcast.lane.b32.xlu1 %v1209_v41, 256 }
 0x1d4   :  { %1225 = vbcast.lane.b32.xlu1 %v1223_v52, 256 }
 0x1d8   :  { %1239 = vbcast.lane.b32.xlu1 %v1237_v19, 256 }
 0x1dc   :  { %1253 = vbcast.lane.b32.xlu1 %v1251_v22, 256 }
 0x1e0   :  { %1267 = vbcast.lane.b32.xlu1 %v1265_v43, 256  ;;  %v1342_v43 = vrot.slane %v3942_v1, %v3372_v50 }
 0x1e1   :  { %1036 = vbcast.lane.b32.xlu0 %v1034_v9, 256 }
 0x1e4   :  { %1281 = vbcast.lane.b32.xlu1 %v1279_v46, 256 }
 0x1e5   :  { %1050 = vbcast.lane.b32.xlu0 %v1048_v53, 256  ;;  %v1356_v53 = vrot.slane %v3942_v1, %v3383_v56 }
 0x1e8   :  { %1295 = vbcast.lane.b32.xlu1 %v1293_v47, 256 }
 0x1e9   :  { %1064 = vbcast.lane.b32.xlu0 %v1062_v49, 256  ;;  %v1370_v49 = vrot.slane %v3942_v1, %v3905_v14 }
 0x1ec   :  { %1309 = vbcast.lane.b32.xlu1 %v1307_v60, 256 }
 0x1ed   :  { %1078 = vbcast.lane.b32.xlu0 %v1076_v15, 256 }
 0x1f0   :  { %1323 = vbcast.lane.b32.xlu1 %v1321_v61, 256  ;;  %v1384_v61 = vrot.slane %v3942_v1, %v3912_v24  ;;  %v1412_v1 = vrot.slane %v3963_v27, %v3383_v56  ;;  %v1440_v56 = vrot.slane %v3963_v27, %v3912_v24 }
 0x1f1   :  { %1092 = vbcast.lane.b32.xlu0 %v1090_v0, 256 }
 0x1f4   :  { %1337 = vbcast.lane.b32.xlu1 %v1335_v62, 256 }
 0x1f5   :  { %1106 = vbcast.lane.b32.xlu0 %v1104_v38, 256  ;;  %v1398_v38 = vrot.slane %v3963_v27, %v3372_v50  ;;  %v1426_v50 = vrot.slane %v3963_v27, %v3905_v14 }
 0x1f8   :  { %1351 = vbcast.lane.b32.xlu1 %v1349_v55, 256 }
 0x1f9   :  { %1120 = vbcast.lane.b32.xlu0 %v1118_v17, 256 }
 0x1fc   :  { %1365 = vbcast.lane.b32.xlu1 %v1363_v26, 256 }
 0x1fd   :  { %1134 = vbcast.lane.b32.xlu0 %v1132_v11, 256 }
 0x200   :  { %1379 = vbcast.lane.b32.xlu1 %v1377_v29, 256 }
 0x201   :  { %1148 = vbcast.lane.b32.xlu0 %v1146_v31, 256 }
 0x204   :  { %1393 = vbcast.lane.b32.xlu1 %v1391_v10, 256  ;;  %v4078_v10 = vpop.permute.xlu0 %1022 }
 0x205   :  { %1162 = vbcast.lane.b32.xlu0 %v1160_v8, 256 }
 0x208   :  { %1407 = vbcast.lane.b32.xlu1 %v1405_v36, 256 }
 0x209   :  { %1176 = vbcast.lane.b32.xlu0 %v1174_v32, 256 }
 0x20c   :  { %1421 = vbcast.lane.b32.xlu1 %v1419_v33, 256 }
 0x20d   :  { %1190 = vbcast.lane.b32.xlu0 %v1188_v51, 256 }
 0x210   :  { %1435 = vbcast.lane.b32.xlu1 %v1433_v37, 256 }
 0x211   :  { %1204 = vbcast.lane.b32.xlu0 %v1202_v54, 256 }
 0x214   :  { %1449 = vbcast.lane.b32.xlu1 %v1447_v2, 256 }
 0x215   :  { %1218 = vbcast.lane.b32.xlu0 %v1216_v58, 256 }
 0x218   :  { %v978_v18 = vpop.xlane.xlu1 %977 }
 0x219   :  { %v991_v12 = vadd.f32 %v3987_v57, %v978_v18  ;;  %1232 = vbcast.lane.b32.xlu0 %v1230_v20, 256 }
 0x21b   :  { %v3992_v25 = vmax.f32 %v991_v12, 0.0 }
 0x21c   :  { %v3994_v59 = vpop.permute.xlu1 %1029 }
 0x21d   :  { %v1516_v6 = vmul.f32 %v3983_v44, %v3992_v25  ;;  %1246 = vbcast.lane.b32.xlu0 %v1244_v7, 256  ;;  %v1518_v42 = vmul.f32 %v3994_v59, %v3992_v25  ;;  %v1515_v14 = vmul.f32 %v3977_v40, %v3992_v25  ;;  %v1517_v27 = vmul.f32 %v4078_v10, %v3992_v25 }
 0x21f   :  { %1775 = vperm.xlu1 %3173, %v1516_v6  }
 0x220   :  { %v4000_v5 = vpop.permute.xlu1 %1043 }
 0x221   :  { %1260 = vbcast.lane.b32.xlu0 %v1258_v28, 256  ;;  %v1520_v39 = vmul.f32 %v4000_v5, %v3992_v25 }
 0x223   :  { %1781 = vperm.xlu1 %3173, %v1518_v42  }
 0x224   :  { %v4006_v34 = vpop.permute.xlu1 %1057 }
 0x225   :  { %1274 = vbcast.lane.b32.xlu0 %v1272_v63, 256  ;;  %v1522_v16 = vmul.f32 %v4006_v34, %v3992_v25 }
 0x227   :  { %1787 = vperm.xlu1 %3173, %v1520_v39  }
 0x228   :  { %v4012_v4 = vpop.permute.xlu1 %1071 }
 0x229   :  { %1288 = vbcast.lane.b32.xlu0 %v1286_v13, 256  ;;  %v1524_v23 = vmul.f32 %v4012_v4, %v3992_v25 }
 0x22b   :  { %1793 = vperm.xlu1 %3173, %v1522_v16  }
 0x22c   :  { %v4018_v45 = vpop.permute.xlu1 %1085 }
 0x22d   :  { %1302 = vbcast.lane.b32.xlu0 %v1300_v21, 256  ;;  %v1526_v52 = vmul.f32 %v4018_v45, %v3992_v25 }
 0x22f   :  { %1799 = vperm.xlu1 %3173, %v1524_v23  }
 0x230   :  { %v4024_v41 = vpop.permute.xlu1 %1099 }
 0x231   :  { %1316 = vbcast.lane.b32.xlu0 %v1314_v30, 256  ;;  %v1528_v22 = vmul.f32 %v4024_v41, %v3992_v25 }
 0x233   :  { %1805 = vperm.xlu1 %3173, %v1526_v52  }
 0x234   :  { %v4030_v19 = vpop.permute.xlu1 %1113 }
 0x235   :  { %1330 = vbcast.lane.b32.xlu0 %v1328_v35, 256  ;;  %v1530_v46 = vmul.f32 %v4030_v19, %v3992_v25 }
 0x237   :  { %1811 = vperm.xlu1 %3173, %v1528_v22  }
 0x238   :  { %v4036_v9 = vpop.permute.xlu1 %1127 }
 0x239   :  { %1344 = vbcast.lane.b32.xlu0 %v1342_v43, 256  ;;  %v1532_v47 = vmul.f32 %v4036_v9, %v3992_v25 }
 0x23b   :  { %1817 = vperm.xlu1 %3173, %v1530_v46  }
 0x23c   :  { %v4042_v3 = vpop.permute.xlu1 %1141 }
 0x23d   :  { %1358 = vbcast.lane.b32.xlu0 %v1356_v53, 256  ;;  %v1534_v15 = vmul.f32 %v4042_v3, %v3992_v25 }
 0x23f   :  { %1823 = vperm.xlu1 %3173, %v1532_v47  }
 0x240   :  { %v4048_v60 = vpop.permute.xlu1 %1155 }
 0x241   :  { %1372 = vbcast.lane.b32.xlu0 %v1370_v49, 256  ;;  %v1536_v62 = vmul.f32 %v4048_v60, %v3992_v25 }
 0x243   :  { %1829 = vperm.xlu1 %3173, %v1534_v15  }
 0x244   :  { %v4054_v0 = vpop.permute.xlu1 %1169 }
 0x245   :  { %1386 = vbcast.lane.b32.xlu0 %v1384_v61, 256  ;;  %v1538_v17 = vmul.f32 %v4054_v0, %v3992_v25 }
 0x247   :  { %1835 = vperm.xlu1 %3173, %v1536_v62  }
 0x248   :  { %v4060_v55 = vpop.permute.xlu1 %1183 }
 0x249   :  { %1400 = vbcast.lane.b32.xlu0 %v1398_v38, 256  ;;  %v1540_v11 = vmul.f32 %v4060_v55, %v3992_v25 }
 0x24b   :  { %1841 = vperm.xlu1 %3173, %v1538_v17  }
 0x24c   :  { %v4066_v26 = vpop.permute.xlu1 %1197 }
 0x24d   :  { %1414 = vbcast.lane.b32.xlu0 %v1412_v1, 256  ;;  %v1542_v31 = vmul.f32 %v4066_v26, %v3992_v25 }
 0x24f   :  { %1847 = vperm.xlu1 %3173, %v1540_v11  }
 0x250   :  { %v4072_v29 = vpop.permute.xlu1 %1211 }
 0x251   :  { %1428 = vbcast.lane.b32.xlu0 %v1426_v50, 256  ;;  %v1544_v36 = vmul.f32 %v4072_v29, %v3992_v25 }
 0x253   :  { %1853 = vperm.xlu1 %3173, %v1542_v31  }
 0x254   :  { %v4080_v8 = vpop.permute.xlu1 %1225 }
 0x255   :  { %1442 = vbcast.lane.b32.xlu0 %v1440_v56, 256  ;;  %v1546_v24 = vmul.f32 %v4080_v8, %v3992_v25 }
 0x257   :  { %1859 = vperm.xlu1 %3173, %v1544_v36  }
 0x258   :  { %v4086_v32 = vpop.permute.xlu1 %1239  ;;  %v4088_v33 = vpop.xlane.xlu0 %980 }
 0x259   :  { %1772 = vperm.xlu0 %3172, %v1515_v14   ;;  %v1548_v54 = vmul.f32 %v4086_v32, %v3992_v25 }
 0x25b   :  { %1865 = vperm.xlu1 %3173, %v1546_v24  }
 0x25c   :  { %v4094_v51 = vpop.permute.xlu1 %1253  ;;  %v4096_v37 = vpop.permute.xlu0 %1036 }
 0x25d   :  { %1778 = vperm.xlu0 %3172, %v1517_v27   ;;  %v1550_v20 = vmul.f32 %v4094_v51, %v3992_v25  ;;  %v1519_v18 = vmul.f32 %v4096_v37, %v3992_v25 }
 0x25f   :  { %1871 = vperm.xlu1 %3173, %v1548_v54  }
 0x260   :  { %v4100_v2 = vpop.permute.xlu1 %1267  ;;  %v4102_v58 = vpop.permute.xlu0 %1050 }
 0x261   :  { %1784 = vperm.xlu0 %3172, %v1519_v18   ;;  %v1552_v6 = vmul.f32 %v4100_v2, %v3992_v25  ;;  %v1521_v28 = vmul.f32 %v4102_v58, %v3992_v25 }
 0x263   :  { %1877 = vperm.xlu1 %3173, %v1550_v20  }
 0x264   :  { %v4108_v12 = vpop.permute.xlu1 %1281  ;;  %v4110_v7 = vpop.permute.xlu0 %1064 }
 0x265   :  { %4948 = vst [vmem:[#allocation8_spill] sm:$0xff] %v4108_v12  ;;  %1790 = vperm.xlu0 %3172, %v1521_v28   ;;  %v1554_v39 = vmul.f32 %v4108_v12, %v3992_v25  ;;  %v1523_v13 = vmul.f32 %v4110_v7, %v3992_v25 }
 0x267   :  { %1883 = vperm.xlu1 %3173, %v1552_v6  }
 0x268   :  { %v4116_v42 = vpop.permute.xlu1 %1295  ;;  %v4118_v63 = vpop.permute.xlu0 %1078 }
 0x269   :  { %1796 = vperm.xlu0 %3172, %v1523_v13   ;;  %v1556_v23 = vmul.f32 %v4116_v42, %v3992_v25  ;;  %v1525_v30 = vmul.f32 %v4118_v63, %v3992_v25 }
 0x26b   :  { %1889 = vperm.xlu1 %3173, %v1554_v39  }
 0x26c   :  { %v4124_v16 = vpop.permute.xlu1 %1309  ;;  %v4126_v21 = vpop.permute.xlu0 %1092 }
 0x26d   :  { %1802 = vperm.xlu0 %3172, %v1525_v30   ;;  %v1558_v22 = vmul.f32 %v4124_v16, %v3992_v25  ;;  %v1527_v43 = vmul.f32 %v4126_v21, %v3992_v25 }
 0x26f   :  { %1895 = vperm.xlu1 %3173, %v1556_v23  }
 0x270   :  { %v4132_v52 = vpop.permute.xlu1 %1323  ;;  %v4134_v35 = vpop.permute.xlu0 %1106 }
 0x271   :  { %1808 = vperm.xlu0 %3172, %v1527_v43   ;;  %v1560_v47 = vmul.f32 %v4132_v52, %v3992_v25  ;;  %v1529_v49 = vmul.f32 %v4134_v35, %v3992_v25 }
 0x273   :  { %1901 = vperm.xlu1 %3173, %v1558_v22  }
 0x274   :  { %v4140_v46 = vpop.permute.xlu1 %1337  ;;  %v4142_v53 = vpop.permute.xlu0 %1120 }
 0x275   :  { %1814 = vperm.xlu0 %3172, %v1529_v49   ;;  %v1562_v62 = vmul.f32 %v4140_v46, %v3992_v25  ;;  %v1531_v38 = vmul.f32 %v4142_v53, %v3992_v25 }
 0x277   :  { %1907 = vperm.xlu1 %3173, %v1560_v47  }
 0x278   :  { %v4148_v15 = vpop.permute.xlu1 %1351  ;;  %v4150_v61 = vpop.permute.xlu0 %1134 }
 0x279   :  { %1820 = vperm.xlu0 %3172, %v1531_v38   ;;  %v1564_v11 = vmul.f32 %v4148_v15, %v3992_v25  ;;  %v1533_v50 = vmul.f32 %v4150_v61, %v3992_v25 }
 0x27b   :  { %1913 = vperm.xlu1 %3173, %v1562_v62  }
 0x27c   :  { %v4156_v17 = vpop.permute.xlu1 %1365  ;;  %v4158_v1 = vpop.permute.xlu0 %1148 }
 0x27d   :  { %1826 = vperm.xlu0 %3172, %v1533_v50   ;;  %v1566_v36 = vmul.f32 %v4156_v17, %v3992_v25  ;;  %v1535_v14 = vmul.f32 %v4158_v1, %v3992_v25 }
 0x27f   :  { %1919 = vperm.xlu1 %3173, %v1564_v11   ;;  %v992_v11 = vadd.f32 %v3987_v57, %v4088_v33 }
 0x280   :  { %v4164_v31 = vpop.permute.xlu1 %1379  ;;  %v4166_v56 = vpop.permute.xlu0 %1162 }
 0x281   :  { %1832 = vperm.xlu0 %3172, %v1535_v14   ;;  %v1568_v54 = vmul.f32 %v4164_v31, %v3992_v25  ;;  %v1537_v20 = vmul.f32 %v4166_v56, %v3992_v25 }
 0x283   :  { %1925 = vperm.xlu1 %3173, %v1566_v36  }
 0x284   :  { %v4172_v24 = vpop.permute.xlu1 %1393  ;;  %v4174_v27 = vpop.permute.xlu0 %1176 }
 0x285   :  { %4949 = vst [vmem:[#allocation9_spill] sm:$0xff] %v4172_v24  ;;  %1838 = vperm.xlu0 %3172, %v1537_v20   ;;  %v1570_v28 = vmul.f32 %v4172_v24, %v3992_v25  ;;  %v1539_v39 = vmul.f32 %v4174_v27, %v3992_v25  ;;  %v4216_v20 = vmax.f32 %v992_v11, 0.0 }
 0x287   :  { %1931 = vperm.xlu1 %3173, %v1568_v54   ;;  %v1598_v24 = vmul.f32 %v4042_v3, %v4216_v20  ;;  %v1600_v12 = vmul.f32 %v4048_v60, %v4216_v20  ;;  %v1602_v3 = vmul.f32 %v4054_v0, %v4216_v20  ;;  %v1604_v60 = vmul.f32 %v4060_v55, %v4216_v20 }
 0x288   :  { %v4180_v18 = vpop.permute.xlu1 %1407  ;;  %v4182_v6 = vpop.permute.xlu0 %1190  ;;  %v1606_v0 = vmul.f32 %v4066_v26, %v4216_v20  ;;  %v1608_v55 = vmul.f32 %v4072_v29, %v4216_v20  ;;  %v1612_v29 = vmul.f32 %v4086_v32, %v4216_v20 }
 0x289   :  { %1844 = vperm.xlu0 %3172, %v1539_v39   ;;  %v1572_v30 = vmul.f32 %v4180_v18, %v3992_v25  ;;  %v1541_v22 = vmul.f32 %v4182_v6, %v3992_v25  ;;  %v1580_v39 = vmul.f32 %v3983_v44, %v4216_v20 }
 0x28b   :  { %1937 = vperm.xlu1 %3173, %v1570_v28  }
 0x28c   :  { %v4188_v13 = vpop.permute.xlu1 %1421  ;;  %v4190_v23 = vpop.permute.xlu0 %1204 }
 0x28d   :  { %1850 = vperm.xlu0 %3172, %v1541_v22   ;;  %v1574_v49 = vmul.f32 %v4188_v13, %v3992_v25  ;;  %v1543_v62 = vmul.f32 %v4190_v23, %v3992_v25 }
 0x28f   :  { %1943 = vperm.xlu1 %3173, %v1572_v30  }
 0x290   :  { %v4196_v43 = vpop.permute.xlu1 %1435  ;;  %v4198_v47 = vpop.permute.xlu0 %1218 }
 0x291   :  { %1856 = vperm.xlu0 %3172, %v1543_v62   ;;  %v1576_v50 = vmul.f32 %v4196_v43, %v3992_v25  ;;  %v1545_v36 = vmul.f32 %v4198_v47, %v3992_v25  ;;  %v1582_v62 = vmul.f32 %v3994_v59, %v4216_v20 }
 0x293   :  { %1949 = vperm.xlu1 %3173, %v1574_v49  }
 0x294   :  { %v4204_v38 = vpop.permute.xlu0 %1232  ;;  %v4212_v14 = vpop.permute.xlu1 %1449 }
 0x295   :  { %1862 = vperm.xlu0 %3172, %v1545_v36   ;;  %v1578_v28 = vmul.f32 %v4212_v14, %v3992_v25  ;;  %v1547_v57 = vmul.f32 %v4204_v38, %v3992_v25  ;;  %v1584_v36 = vmul.f32 %v4000_v5, %v4216_v20 }
 0x297   :  { %1955 = vperm.xlu1 %3173, %v1576_v50  }
 0x298   :  { %v4214_v54 = vpop.permute.xlu0 %1246 }
 0x299   :  { %1868 = vperm.xlu0 %3172, %v1547_v57   ;;  %v1549_v30 = vmul.f32 %v4214_v54, %v3992_v25 }
 0x29b   :  { %1961 = vperm.xlu1 %3173, %v1578_v28  }
 0x29c   :  { %v4222_v33 = vpop.permute.xlu0 %1260 }
 0x29d   :  { %1874 = vperm.xlu0 %3172, %v1549_v30   ;;  %v1551_v11 = vmul.f32 %v4222_v33, %v3992_v25 }
 0x29e   :  { %v4228_v22 = vpop.permute.xlu1 %1775 }
 0x29f   :  { %4950 = vst [vmem:[#allocation10_spill] sm:$0xff] %v4228_v22  ;;  %1967 = vperm.xlu1 %3173, %v1580_v39   ;;  %v1586_v39 = vmul.f32 %v4006_v34, %v4216_v20  ;;  %v1596_v22 = vmul.f32 %v4036_v9, %v4216_v20 }
 0x2a0   :  { %v4230_v49 = vpop.permute.xlu0 %1274 }
 0x2a1   :  { %1880 = vperm.xlu0 %3172, %v1551_v11   ;;  %v1553_v28 = vmul.f32 %v4230_v49, %v3992_v25  ;;  %v1588_v11 = vmul.f32 %v4012_v4, %v4216_v20 }
 0x2a2   :  { %v4236_v50 = vpop.permute.xlu1 %1781 }
 0x2a3   :  { %4951 = vst [vmem:[#allocation11_spill] sm:$0xff] %v4236_v50  ;;  %1973 = vperm.xlu1 %3173, %v1582_v62   ;;  %v1594_v50 = vmul.f32 %v4030_v19, %v4216_v20 }
 0x2a4   :  { %v4238_v44 = vpop.permute.xlu0 %1288 }
 0x2a5   :  { %1886 = vperm.xlu0 %3172, %v1553_v28   ;;  %v1555_v30 = vmul.f32 %v4238_v44, %v3992_v25  ;;  %v1619_v32 = vmul.f32 %v4238_v44, %v4216_v20  ;;  %v1589_v44 = vmul.f32 %v4118_v63, %v4216_v20 }
 0x2a6   :  { %v4244_v57 = vpop.permute.xlu1 %1787 }
 0x2a7   :  { %4952 = vst [vmem:[#allocation12_spill] sm:$0xff] %v4244_v57  ;;  %1979 = vperm.xlu1 %3173, %v1584_v36   ;;  %v1590_v57 = vmul.f32 %v4018_v45, %v4216_v20 }
 0x2a8   :  { %v4246_v59 = vpop.permute.xlu0 %1302 }
 0x2a9   :  { %1892 = vperm.xlu0 %3172, %v1555_v30   ;;  %v1557_v36 = vmul.f32 %v4246_v59, %v3992_v25 }
 0x2aa   :  { %v4252_v62 = vpop.permute.xlu1 %1793 }
 0x2ab   :  { %4953 = vst [vmem:[#allocation13_spill] sm:$0xff] %v4252_v62  ;;  %1985 = vperm.xlu1 %3173, %v1586_v39   ;;  %v1592_v62 = vmul.f32 %v4024_v41, %v4216_v20 }
 0x2ac   :  { %v4254_v5 = vpop.permute.xlu0 %1316 }
 0x2ad   :  { %1898 = vperm.xlu0 %3172, %v1557_v36   ;;  %v1559_v39 = vmul.f32 %v4254_v5, %v3992_v25 }
 0x2ae   :  { %v4260_v28 = vpop.permute.xlu1 %1799 }
 0x2af   :  { %1991 = vperm.xlu1 %3173, %v1588_v11  }
 0x2b0   :  { %v4262_v34 = vpop.permute.xlu0 %1330 }
 0x2b1   :  { %1904 = vperm.xlu0 %3172, %v1559_v39   ;;  %v1561_v11 = vmul.f32 %v4262_v34, %v3992_v25 }
 0x2b2   :  { %v4268_v30 = vpop.permute.xlu1 %1805 }
 0x2b3   :  { %1997 = vperm.xlu1 %3173, %v1590_v57  }
 0x2b4   :  { %v4270_v4 = vpop.permute.xlu0 %1344 }
 0x2b5   :  { %1910 = vperm.xlu0 %3172, %v1561_v11   ;;  %v1563_v57 = vmul.f32 %v4270_v4, %v3992_v25 }
 0x2b6   :  { %v4276_v36 = vpop.permute.xlu1 %1811 }
 0x2b7   :  { %2003 = vperm.xlu1 %3173, %v1592_v62  }
 0x2b8   :  { %v4278_v45 = vpop.permute.xlu0 %1358 }
 0x2b9   :  { %1916 = vperm.xlu0 %3172, %v1563_v57   ;;  %v1565_v62 = vmul.f32 %v4278_v45, %v3992_v25 }
 0x2ba   :  { %v4284_v39 = vpop.permute.xlu1 %1817 }
 0x2bb   :  { %2009 = vperm.xlu1 %3173, %v1594_v50  }
 0x2bc   :  { %v4286_v41 = vpop.permute.xlu0 %1372 }
 0x2bd   :  { %1922 = vperm.xlu0 %3172, %v1565_v62   ;;  %v1567_v50 = vmul.f32 %v4286_v41, %v3992_v25 }
 0x2be   :  { %v4292_v11 = vpop.permute.xlu1 %1823 }
 0x2bf   :  { %4954 = vst [vmem:[#allocation14_spill] sm:$0xff] %v4292_v11  ;;  %2015 = vperm.xlu1 %3173, %v1596_v22  }
 0x2c0   :  { %v4294_v19 = vpop.permute.xlu0 %1386 }
 0x2c1   :  { %1928 = vperm.xlu0 %3172, %v1567_v50   ;;  %v1569_v22 = vmul.f32 %v4294_v19, %v3992_v25 }
 0x2c2   :  { %v4300_v57 = vpop.permute.xlu1 %1829 }
 0x2c3   :  { %4955 = vst [vmem:[#allocation15_spill] sm:$0xff] %v4300_v57  ;;  %2021 = vperm.xlu1 %3173, %v1598_v24  }
 0x2c4   :  { %v1401_v9 = vpop.permute.xlu0 %1400 }
 0x2c5   :  { %1934 = vperm.xlu0 %3172, %v1569_v22   ;;  %v1571_v57 = vmul.f32 %v1401_v9, %v3992_v25 }
 0x2c6   :  { %v4306_v62 = vpop.permute.xlu1 %1835 }
 0x2c7   :  { %4956 = vst [vmem:[#allocation16_spill] sm:$0xff] %v4306_v62  ;;  %2027 = vperm.xlu1 %3173, %v1600_v12  }
 0x2c8   :  { %v4308_v11 = vpop.permute.xlu0 %1414 }
 0x2c9   :  { %1940 = vperm.xlu0 %3172, %v1571_v57   ;;  %v1573_v12 = vmul.f32 %v4308_v11, %v3992_v25  ;;  %v1637_v63 = vmul.f32 %v4308_v11, %v4216_v20  ;;  %v1597_v11 = vmul.f32 %v4150_v61, %v4216_v20  ;;  %v1624_v61 = vmul.f32 %v4132_v52, %v4216_v20 }
 0x2ca   :  { %v4313_v24 = vpop.permute.xlu1 %1841  ;;  %v1625_v52 = vmul.f32 %v4262_v34, %v4216_v20  ;;  %v1609_v34 = vmul.f32 %v4198_v47, %v4216_v20 }
 0x2cb   :  { %4957 = vst [vmem:[#allocation17_spill] sm:$0xff] %v4313_v24  ;;  %2033 = vperm.xlu1 %3173, %v1602_v3  }
 0x2cc   :  { %v4317_v50 = vpop.permute.xlu0 %1428 }
 0x2cd   :  { %1946 = vperm.xlu0 %3172, %v1573_v12   ;;  %v1575_v24 = vmul.f32 %v4317_v50, %v3992_v25  ;;  %v1610_v12 = vmul.f32 %v4080_v8, %v4216_v20  ;;  %v1614_v8 = vmul.f32 %v4094_v51, %v4216_v20  ;;  %v1627_v51 = vmul.f32 %v4270_v4, %v4216_v20 }
 0x2ce   :  { %v4321_v22 = vpop.permute.xlu1 %1847  ;;  %v1591_v4 = vmul.f32 %v4126_v21, %v4216_v20  ;;  %v1630_v21 = vmul.f32 %v4156_v17, %v4216_v20  ;;  %v1599_v17 = vmul.f32 %v4158_v1, %v4216_v20  ;;  %v1640_v1 = vmul.f32 %v4196_v43, %v4216_v20 }
 0x2cf   :  { %2039 = vperm.xlu1 %3173, %v1604_v60   ;;  %v1607_v43 = vmul.f32 %v4190_v23, %v4216_v20  ;;  %v1642_v23 = vmul.f32 %v4212_v14, %v4216_v20  ;;  %v1615_v14 = vmul.f32 %v4222_v33, %v4216_v20 }
 0x2d0   :  { %v4329_v57 = vpop.permute.xlu0 %1442 }
 0x2d1   :  { %1952 = vperm.xlu0 %3172, %v1575_v24   ;;  %v1577_v62 = vmul.f32 %v4329_v57, %v3992_v25 }
 0x2d2   :  { %v4327_v3 = vpop.permute.xlu1 %1853 }
 0x2d3   :  { %4958 = vst [vmem:[#allocation18_spill] sm:$0xff] %v4327_v3  ;;  %2045 = vperm.xlu1 %3173, %v1606_v0   ;;  %v1579_v3 = vmul.f32 %v3977_v40, %v4216_v20  ;;  %v1583_v40 = vmul.f32 %v4096_v37, %v4216_v20  ;;  %v1587_v37 = vmul.f32 %v4110_v7, %v4216_v20 }
 0x2d4   :  { %v1621_v7 = vmul.f32 %v4246_v59, %v4216_v20  ;;  %v1595_v59 = vmul.f32 %v4142_v53, %v4216_v20  ;;  %v1639_v53 = vmul.f32 %v4317_v50, %v4216_v20  ;;  %v1603_v50 = vmul.f32 %v4174_v27, %v4216_v20 }
 0x2d5   :  { %1958 = vperm.xlu0 %3172, %v1577_v62   ;;  %v1581_v62 = vmul.f32 %v4078_v10, %v4216_v20  ;;  %v1585_v10 = vmul.f32 %v4102_v58, %v4216_v20  ;;  %v1635_v58 = vmul.f32 %v1401_v9, %v4216_v20  ;;  %v1593_v9 = vmul.f32 %v4134_v35, %v4216_v20 }
 0x2d6   :  { %v4335_v60 = vpop.permute.xlu1 %1859  ;;  %v1623_v35 = vmul.f32 %v4254_v5, %v4216_v20  ;;  %v1601_v5 = vmul.f32 %v4166_v56, %v4216_v20  ;;  %v1605_v56 = vmul.f32 %v4182_v6, %v4216_v20  ;;  %v1641_v27 = vmul.f32 %v4329_v57, %v4216_v20 }
 0x2d7   :  { %2051 = vperm.xlu1 %3173, %v1608_v55   ;;  %v1626_v6 = vmul.f32 %v4140_v46, %v4216_v20  ;;  %v1611_v57 = vmul.f32 %v4204_v38, %v4216_v20  ;;  %v1613_v46 = vmul.f32 %v4214_v54, %v4216_v20  ;;  %v1628_v54 = vmul.f32 %v4148_v15, %v4216_v20 }
 0x2d8   :  { %v4337_v26 = vpop.permute.xlu0 %1772 }
 0x2d9   :  { %1964 = vperm.xlu0 %3172, %v1579_v3  }
 0x2da   :  { %v4343_v0 = vpop.permute.xlu1 %1865 }
 0x2db   :  { %2057 = vperm.xlu1 %3173, %v1610_v12  }
 0x2dc   :  { %v4347_v25 = vpop.permute.xlu0 %1778 }
 0x2dd   :  { %1970 = vperm.xlu0 %3172, %v1581_v62  }
 0x2de   :  { %v4351_v24 = vpop.permute.xlu1 %1871 }
 0x2df   :  { %2063 = vperm.xlu1 %3173, %v1612_v29  }
 0x2e0   :  { %v4359_v3 = vpop.permute.xlu0 %1784 }
 0x2e1   :  { %1976 = vperm.xlu0 %3172, %v1583_v40  }
 0x2e2   :  { %v4357_v55 = vpop.permute.xlu1 %1877 }
 0x2e3   :  { %2069 = vperm.xlu1 %3173, %v1614_v8  }
 0x2e4   :  { %v4367_v29 = vpop.permute.xlu0 %1790 }
 0x2e5   :  { %1982 = vperm.xlu0 %3172, %v1585_v10  }
 0x2e6   :  { %v4365_v12 = vpop.permute.xlu1 %1883 }
 0x2e7   :  { %2084 = vperm.xlu1 %3173, %v1619_v32  }
 0x2e8   :  { %v4375_v8 = vpop.permute.xlu0 %1796 }
 0x2e9   :  { %1988 = vperm.xlu0 %3172, %v1587_v37   ;;  %v2190_v33 = vrot.slane %v4375_v8, %v3639_v48 }
 0x2ea   :  { %v4373_v62 = vpop.permute.xlu1 %1889 }
 0x2eb   :  { %2108 = vperm.xlu1 %3173, %v1627_v51  }
 0x2ec   :  { %v4382_v32 = vpop.permute.xlu0 %1802 }
 0x2ed   :  { %1994 = vperm.xlu0 %3172, %v1589_v44  }
 0x2ee   :  { %v4380_v40 = vpop.permute.xlu1 %1895 }
 0x2ef   :  { %2132 = vperm.xlu1 %3173, %v1635_v58  }
 0x2f0   :  { %v4390_v51 = vpop.permute.xlu0 %1808 }
 0x2f1   :  { %2000 = vperm.xlu0 %3172, %v1591_v4  }
 0x2f2   :  { %v4388_v10 = vpop.permute.xlu1 %1901 }
 0x2f3   :  { %2090 = vperm.xlu1 %3173, %v1621_v7  }
 0x2f4   :  { %v4398_v58 = vpop.permute.xlu0 %1814 }
 0x2f5   :  { %2006 = vperm.xlu0 %3172, %v1593_v9  }
 0x2f6   :  { %v4396_v37 = vpop.permute.xlu1 %1907 }
 0x2f7   :  { %2138 = vperm.xlu1 %3173, %v1637_v63  }
 0x2f8   :  { %v4406_v7 = vpop.permute.xlu0 %1820 }
 0x2f9   :  { %2012 = vperm.xlu0 %3172, %v1595_v59  }
 0x2fa   :  { %v4404_v44 = vpop.permute.xlu1 %1913 }
 0x2fb   :  { %2117 = vperm.xlu1 %3173, %v1630_v21  }
 0x2fc   :  { %v4414_v63 = vpop.permute.xlu0 %1826 }
 0x2fd   :  { %2018 = vperm.xlu0 %3172, %v1597_v11  }
 0x2fe   :  { %v4412_v4 = vpop.permute.xlu1 %1919 }
 0x2ff   :  { %2096 = vperm.xlu1 %3173, %v1623_v35  }
 0x300   :  { %v4422_v21 = vpop.permute.xlu0 %1832 }
 0x301   :  { %2024 = vperm.xlu0 %3172, %v1599_v17  }
 0x302   :  { %v4420_v9 = vpop.permute.xlu1 %1925 }
 0x303   :  { %2144 = vperm.xlu1 %3173, %v1639_v53  }
 0x304   :  { %v4430_v35 = vpop.permute.xlu0 %1838 }
 0x305   :  { %2030 = vperm.xlu0 %3172, %v1601_v5  }
 0x306   :  { %v4428_v59 = vpop.permute.xlu1 %1931 }
 0x307   :  { %4959 = vst [vmem:[#allocation19_spill] sm:$0xff] %v4428_v59  ;;  %2099 = vperm.xlu1 %3173, %v1624_v61   ;;  %v2206_v59 = vrot.slane %v4390_v51, %v3639_v48 }
 0x308   :  { %v4438_v53 = vpop.permute.xlu0 %1844 }
 0x309   :  { %2036 = vperm.xlu0 %3172, %v1603_v50  }
 0x30a   :  { %v4436_v11 = vpop.permute.xlu1 %1937 }
 0x30b   :  { %4960 = vst [vmem:[#allocation20_spill] sm:$0xff] %v4436_v11  ;;  %2147 = vperm.xlu1 %3173, %v1640_v1  }
 0x30c   :  { %v4446_v61 = vpop.permute.xlu0 %1850 }
 0x30d   :  { %2042 = vperm.xlu0 %3172, %v1605_v56  }
 0x30e   :  { %v4444_v17 = vpop.permute.xlu1 %1943 }
 0x30f   :  { %2102 = vperm.xlu1 %3173, %v1625_v52  }
 0x310   :  { %v4454_v1 = vpop.permute.xlu0 %1856 }
 0x311   :  { %2048 = vperm.xlu0 %3172, %v1607_v43  }
 0x312   :  { %v4452_v5 = vpop.permute.xlu1 %1949 }
 0x313   :  { %2150 = vperm.xlu1 %3173, %v1641_v27  }
 0x314   :  { %v4462_v52 = vpop.permute.xlu0 %1862 }
 0x315   :  { %2054 = vperm.xlu0 %3172, %v1609_v34   ;;  %v1620_v34 = vmul.f32 %v4116_v42, %v4216_v20  ;;  %v2194_v42 = vrot.slane %v4260_v28, %v3639_v48  ;;  %v2202_v28 = vrot.slane %v4268_v30, %v3639_v48 }
 0x316   :  { %v4460_v50 = vpop.permute.xlu1 %1955 }
 0x317   :  { %2105 = vperm.xlu1 %3173, %v1626_v6   ;;  %v2678_v15 = vsel %vm964_vm7, %v2194_v42, %v2190_v33  ;;  %v2330_v42 = vrot.slane %v4388_v10, %v3639_v48  ;;  %v2218_v10 = vrot.slane %v4284_v39, %v3639_v48  ;;  %v2346_v39 = vrot.slane %v4404_v44, %v3639_v48 }
 0x318   :  { %v4470_v27 = vpop.permute.xlu0 %1868 }
 0x319   :  { %2060 = vperm.xlu0 %3172, %v1611_v57  }
 0x31a   :  { %v4468_v56 = vpop.permute.xlu1 %1961 }
 0x31b   :  { %2153 = vperm.xlu1 %3173, %v1642_v23  }
 0x31c   :  { %v4476_v43 = vpop.permute.xlu0 %1874 }
 0x31d   :  { %2066 = vperm.xlu0 %3172, %v1613_v46  }
 0x31e   :  { %v4474_v47 = vpop.permute.xlu1 %1967 }
 0x320   :  { %v4482_v38 = vpop.permute.xlu0 %1880 }
 0x321   :  { %2072 = vperm.xlu0 %3172, %v1615_v14   ;;  %v2198_v14 = vrot.slane %v4382_v32, %v3639_v48 }
 0x322   :  { %v4480_v6 = vpop.permute.xlu1 %1973 }
 0x323   :  { %4961 = vst [vmem:[#allocation21_spill] sm:$0xff] %v4480_v6  ;;  %v2679_v8 = vsel %vm966_vm8, %v2198_v14, %v2678_v15 }
 0x324   :  { %v4488_v57 = vpop.permute.xlu0 %1886 }
 0x325   :  { %2087 = vperm.xlu0 %3172, %v1620_v34  }
 0x326   :  { %v4486_v23 = vpop.permute.xlu1 %1979 }
 0x327   :  { %4962 = vst [vmem:[#allocation22_spill] sm:$0xff] %v4486_v23  ;;  %v1636_v23 = vmul.f32 %v4180_v18, %v4216_v20  ;;  %v2322_v18 = vrot.slane %v4380_v40, %v3639_v48 }
 0x328   :  { %v1893_v11 = vpop.permute.xlu0 %1892 }
 0x329   :  { %2111 = vperm.xlu0 %3172, %v1628_v54   ;;  %v1629_v54 = vmul.f32 %v4278_v45, %v4216_v20  ;;  %v2210_v45 = vrot.slane %v4276_v36, %v3639_v48 }
 0x32a   :  { %v4492_v46 = vpop.permute.xlu1 %1985 }
 0x32b   :  { %4963 = vst [vmem:[#allocation23_spill] sm:$0xff] %v4492_v46  ;;  %v2318_v46 = vrot.slane %v1893_v11, %v3639_v48  ;;  %v2680_v11 = vsel %vm968_vm9, %v2202_v28, %v2679_v8 }
 0x32c   :  { %v1899_v6 = vpop.permute.xlu0 %1898 }
 0x32d   :  { %v2326_v32 = vrot.slane %v1899_v6, %v3639_v48  ;;  %2135 = vperm.xlu0 %3172, %v1636_v23   ;;  %v2706_v14 = vsel %vm964_vm7, %v2322_v18, %v2318_v46  ;;  %v2681_v6 = vsel %vm2670_vm11, %v2206_v59, %v2680_v11  ;;  %v2214_v23 = vrot.slane %v4398_v58, %v3639_v48 }
 0x32e   :  { %v4502_v34 = vpop.permute.xlu1 %1991  ;;  %v1622_v46 = vmul.f32 %v4124_v16, %v4216_v20  ;;  %v2682_v8 = vsel %vm2672_vm12, %v2210_v45, %v2681_v6  ;;  %v2338_v16 = vrot.slane %v4396_v37, %v3639_v48  ;;  %v1638_v18 = vmul.f32 %v4188_v13, %v4216_v20 }
 0x32f   :  { %v2707_v30 = vsel %vm966_vm8, %v2326_v32, %v2706_v14  ;;  %v2683_v36 = vsel %vm2674_vm13, %v2214_v23, %v2682_v8  ;;  %v1631_v37 = vmul.f32 %v4286_v41, %v4216_v20  ;;  %v1616_v45 = vmul.f32 %v4100_v2, %v4216_v20 }
 0x330   :  { %v1905_v51 = vpop.permute.xlu0 %1904  ;;  %v2708_v59 = vsel %vm968_vm9, %v2330_v42, %v2707_v30  ;;  %v2684_v14 = vsel %vm2676_vm14, %v2218_v10, %v2683_v36  ;;  %v1632_v41 = vmul.f32 %v4164_v31, %v4216_v20  ;;  %v1617_v8 = vmul.f32 %v4230_v49, %v4216_v20 }
 0x331   :  { %v2334_v40 = vrot.slane %v1905_v51, %v3639_v48  ;;  %2114 = vperm.xlu0 %3172, %v1629_v54   ;;  %v2803_v23 = vsel %vm2799_vm15, %v2684_v14, 0.0  ;;  %v1633_v36 = vmul.f32 %v4294_v19, %v4216_v20  ;;  %v2386_v31 = vrot.slane %v4444_v17, %v3639_v48  ;;  %v4964_v14 = vld [vmem:[#allocation8_spill] sm:$0xff] }
 0x332   :  { %v4516_v33 = vpop.permute.xlu1 %1997  ;;  %v2394_v19 = vrot.slane %v4452_v5, %v3639_v48  ;;  %v2410_v5 = vrot.slane %v4468_v56, %v3639_v48 }
 0x333   :  { %v2709_v32 = vsel %vm2670_vm11, %v2334_v40, %v2708_v59 }
 0x334   :  { %v1911_v58 = vpop.permute.xlu0 %1910  ;;  %v2710_v51 = vsel %vm2672_vm12, %v2338_v16, %v2709_v32 }
 0x335   :  { %v2342_v28 = vrot.slane %v1911_v58, %v3639_v48  ;;  %2093 = vperm.xlu0 %3172, %v1622_v46  }
 0x336   :  { %v4531_v15 = vpop.permute.xlu1 %2003 }
 0x337   :  { %v2711_v6 = vsel %vm2674_vm13, %v2342_v28, %v2710_v51  ;;  %v1618_v51 = vmul.f32 %v4964_v14, %v4216_v20  ;;  %v2166_v14 = vrot.slane %v4347_v25, %v3639_v48  ;;  %v4967_v25 = vld [vmem:[#allocation11_spill] sm:$0xff] }
 0x338   :  { %v4546_v11 = vpop.permute.xlu0 %1916  ;;  %v2712_v40 = vsel %vm2676_vm14, %v2346_v39, %v2711_v6 }
 0x339   :  { %2141 = vperm.xlu0 %3172, %v1638_v18   ;;  %v2815_v44 = vsel %vm2799_vm15, %v2712_v40, 0.0  ;;  %v4965_v40 = vld [vmem:[#allocation9_spill] sm:$0xff] }
 0x33a   :  { %v4544_v54 = vpop.permute.xlu1 %2009 }
 0x33c   :  { %v4558_v30 = vpop.permute.xlu0 %1922 }
 0x33d   :  { %2120 = vperm.xlu0 %3172, %v1631_v37  }
 0x33e   :  { %v4555_v13 = vpop.permute.xlu1 %2015 }
 0x33f   :  { %2804 = vadd.xlane.f32.xlu1 %v2803_v23 }
 0x340   :  { %v4566_v46 = vpop.permute.xlu0 %1928 }
 0x341   :  { %2075 = vperm.xlu0 %3172, %v1616_v45   ;;  %v1634_v45 = vmul.f32 %v4965_v40, %v4216_v20 }
 0x342   :  { %v4563_v42 = vpop.permute.xlu1 %2021 }
 0x343   :  { %2816 = vadd.xlane.f32.xlu1 %v2815_v44 }
 0x344   :  { %v4572_v58 = vpop.permute.xlu0 %1934 }
 0x345   :  { %2123 = vperm.xlu0 %3172, %v1632_v41   ;;  %v2402_v41 = vrot.slane %v4460_v50, %v3639_v48 }
 0x346   :  { %v4570_v59 = vpop.permute.xlu1 %2027 }
 0x348   :  { %v1941_v32 = vpop.permute.xlu0 %1940 }
 0x349   :  { %2078 = vperm.xlu0 %3172, %v1617_v8   ;;  %v2382_v28 = vrot.slane %v1941_v32, %v3639_v48 }
 0x34a   :  { %v4576_v2 = vpop.permute.xlu1 %2033 }
 0x34b   :  { %v2720_v49 = vsel %vm964_vm7, %v2386_v31, %v2382_v28 }
 0x34c   :  { %v1947_v16 = vpop.permute.xlu0 %1946 }
 0x34d   :  { %v2390_v18 = vrot.slane %v1947_v16, %v3639_v48  ;;  %2126 = vperm.xlu0 %3172, %v1633_v36  }
 0x34e   :  { %v4581_v10 = vpop.permute.xlu1 %2039 }
 0x34f   :  { %v2721_v6 = vsel %vm966_vm8, %v2390_v18, %v2720_v49  ;;  %v2158_v49 = vrot.slane %v4337_v26, %v3639_v48 }
 0x350   :  { %v1953_v37 = vpop.permute.xlu0 %1952  ;;  %v2722_v17 = vsel %vm968_vm9, %v2394_v19, %v2721_v6 }
 0x351   :  { %v2398_v23 = vrot.slane %v1953_v37, %v3639_v48  ;;  %2081 = vperm.xlu0 %3172, %v1618_v51   ;;  %v4966_v51 = vld [vmem:[#allocation10_spill] sm:$0xff] }
 0x352   :  { %v4590_v39 = vpop.permute.xlu1 %2045  ;;  %v2162_v6 = vrot.slane %v4966_v51, %v3639_v48 }
 0x353   :  { %v2723_v44 = vsel %vm2670_vm11, %v2398_v23, %v2722_v17  ;;  %v2174_v23 = vrot.slane %v4359_v3, %v3639_v48  ;;  %v2222_v17 = vrot.slane %v4406_v7, %v3639_v48 }
 0x354   :  { %v1959_v8 = vpop.permute.xlu0 %1958  ;;  %v2724_v36 = vsel %vm2672_vm12, %v2402_v41, %v2723_v44  ;;  %v2667_v19 = vsel %vm964_vm7, %v2162_v6, %v2158_v49  ;;  %v2230_v44 = vrot.slane %v4414_v63, %v3639_v48  ;;  %v4968_v41 = vld [vmem:[#allocation14_spill] sm:$0xff]  ;;  %v2254_v63 = vrot.slane %v4438_v53, %v3639_v48 }
 0x355   :  { %v2406_v28 = vrot.slane %v1959_v8, %v3639_v48  ;;  %2129 = vperm.xlu0 %3172, %v1634_v45   ;;  %v2668_v37 = vsel %vm966_vm8, %v2166_v14, %v2667_v19  ;;  %v2170_v45 = vrot.slane %v4967_v25, %v3639_v48  ;;  %v2226_v8 = vrot.slane %v4968_v41, %v3639_v48  ;;  %v4970_v14 = vld [vmem:[#allocation15_spill] sm:$0xff] }
 0x356   :  { %v4601_v32 = vpop.permute.xlu1 %2051  ;;  %v2234_v51 = vrot.slane %v4970_v14, %v3639_v48  ;;  %v2262_v6 = vrot.slane %v4446_v61, %v3639_v48 }
 0x357   :  { %v2725_v31 = vsel %vm2674_vm13, %v2406_v28, %v2724_v36  ;;  %v2669_v28 = vsel %vm968_vm9, %v2170_v45, %v2668_v37  ;;  %v2182_v36 = vrot.slane %v4367_v29, %v3639_v48  ;;  %v2258_v29 = vrot.slane %v4321_v22, %v3639_v48  ;;  %v4971_v37 = vld [vmem:[#allocation16_spill] sm:$0xff] }
 0x358   :  { %v4608_v16 = vpop.permute.xlu0 %1964  ;;  %v2726_v20 = vsel %vm2676_vm14, %v2410_v5, %v2725_v31  ;;  %v2671_v3 = vsel %vm2670_vm11, %v2174_v23, %v2669_v28  ;;  %v2685_v5 = vsel %vm964_vm7, %v2226_v8, %v2222_v17  ;;  %v2246_v45 = vrot.slane %v4430_v35, %v3639_v48 }
 0x359   :  { %v2821_v18 = vsel %vm2799_vm15, %v2726_v20, 0.0  ;;  %v2686_v31 = vsel %vm966_vm8, %v2230_v44, %v2685_v5  ;;  %v2238_v20 = vrot.slane %v4422_v21, %v3639_v48  ;;  %v2242_v21 = vrot.slane %v4971_v37, %v3639_v48 }
 0x35a   :  { %v4612_v50 = vpop.permute.xlu1 %2057  ;;  %2822 = vadd.xlane.f32.xlu1 %v2821_v18  ;;  %v4969_v18 = vld [vmem:[#allocation12_spill] sm:$0xff]  ;;  %v2687_v23 = vsel %vm968_vm9, %v2234_v51, %v2686_v31  ;;  %v2692_v61 = vsel %vm964_vm7, %v2258_v29, %v2254_v63  ;;  %v2270_v22 = vrot.slane %v4454_v1, %v3639_v48  ;;  %v2286_v8 = vrot.slane %v4470_v27, %v3639_v48  ;;  %v4973_v31 = vld [vmem:[#allocation17_spill] sm:$0xff] }
 0x35b   :  { %v2178_v49 = vrot.slane %v4969_v18, %v3639_v48  ;;  %v2688_v25 = vsel %vm2670_vm11, %v2238_v20, %v2687_v23  ;;  %v2693_v41 = vsel %vm966_vm8, %v2262_v6, %v2692_v61  ;;  %v2250_v35 = vrot.slane %v4973_v31, %v3639_v48  ;;  %v4974_v20 = vld [vmem:[#allocation18_spill] sm:$0xff] }
 0x35c   :  { %v4618_v56 = vpop.permute.xlu0 %1970  ;;  %v2266_v63 = vrot.slane %v4974_v20, %v3639_v48  ;;  %v2274_v1 = vrot.slane %v4335_v60, %v3639_v48  ;;  %v2290_v27 = vrot.slane %v4351_v24, %v3639_v48  ;;  %v2450_v18 = vrot.slane %v4502_v34, %v3639_v48 }
 0x35d   :  { %v2673_v17 = vsel %vm2672_vm12, %v2178_v49, %v2671_v3  ;;  %v4972_v3 = vld [vmem:[#allocation13_spill] sm:$0xff]  ;;  %v2689_v51 = vsel %vm2672_vm12, %v2242_v21, %v2688_v25  ;;  %v2278_v24 = vrot.slane %v4462_v52, %v3639_v48  ;;  %v2302_v21 = vrot.slane %v4482_v38, %v3639_v48 }
 0x35e   :  { %v4628_v40 = vpop.permute.xlu1 %2063  ;;  %v2675_v44 = vsel %vm2674_vm13, %v2182_v36, %v2673_v17  ;;  %v2186_v5 = vrot.slane %v4972_v3, %v3639_v48  ;;  %v2294_v36 = vrot.slane %v4476_v43, %v3639_v48  ;;  %v2694_v6 = vsel %vm968_vm9, %v2266_v63, %v2693_v41 }
 0x35f   :  { %v2690_v37 = vsel %vm2674_vm13, %v2246_v45, %v2689_v51  ;;  %v2695_v60 = vsel %vm2670_vm11, %v2270_v22, %v2694_v6  ;;  %v2699_v34 = vsel %vm964_vm7, %v2290_v27, %v2286_v8  ;;  %v2350_v17 = vrot.slane %v4546_v11, %v3639_v48 }
 0x360   :  { %v4630_v26 = vpop.permute.xlu0 %1976  ;;  %v2677_v43 = vsel %vm2676_vm14, %v2186_v5, %v2675_v44  ;;  %v2282_v45 = vrot.slane %v4343_v0, %v3639_v48  ;;  %v2298_v52 = vrot.slane %v4357_v55, %v3639_v48  ;;  %v2458_v61 = vrot.slane %v4516_v33, %v3639_v48 }
 0x361   :  { %v2358_v44 = vrot.slane %v4558_v30, %v3639_v48  ;;  %v2354_v38 = vrot.slane %v4412_v4, %v3639_v48  ;;  %v2800_v22 = vsel %vm2799_vm15, %v2677_v43, 0.0  ;;  %v2696_v8 = vsel %vm2672_vm12, %v2274_v1, %v2695_v60 }
 0x362   :  { %v4656_v19 = vpop.permute.xlu1 %2069  ;;  %v2691_v33 = vsel %vm2676_vm14, %v2250_v35, %v2690_v37  ;;  %v2697_v30 = vsel %vm2674_vm13, %v2278_v24, %v2696_v8  ;;  %v2310_v4 = vrot.slane %v4488_v57, %v3639_v48  ;;  %v2466_v20 = vrot.slane %v4531_v15, %v3639_v48 }
 0x363   :  { %v2713_v5 = vsel %vm964_vm7, %v2354_v38, %v2350_v17  ;;  %v2414_v35 = vrot.slane %v4608_v16, %v3639_v48  ;;  %v2306_v57 = vrot.slane %v4365_v12, %v3639_v48  ;;  %v2362_v27 = vrot.slane %v4420_v9, %v3639_v48  ;;  %v4975_v17 = vld [vmem:[#allocation19_spill] sm:$0xff] }
 0x364   :  { %v4641_v7 = vpop.permute.xlu0 %1982  ;;  %v2714_v63 = vsel %vm966_vm8, %v2358_v44, %v2713_v5  ;;  %v2806_v16 = vsel %vm2799_vm15, %v2691_v33, 0.0  ;;  %v2698_v9 = vsel %vm2676_vm14, %v2282_v45, %v2697_v30  ;;  %v2374_v24 = vrot.slane %v4572_v58, %v3639_v48  ;;  %v4976_v45 = vld [vmem:[#allocation21_spill] sm:$0xff]  ;;  %v4978_v33 = vld [vmem:[#allocation22_spill] sm:$0xff] }
 0x365   :  { %v2715_v12 = vsel %vm968_vm9, %v2362_v27, %v2714_v63  ;;  %v2809_v58 = vsel %vm2799_vm15, %v2698_v9, 0.0  ;;  %v2482_v44 = vrot.slane %v4555_v13, %v3639_v48  ;;  %v2434_v30 = vrot.slane %v4978_v33, %v3639_v48 }
 0x366   :  { %v4689_v49 = vpop.permute.xlu1 %2084 }
 0x368   :  { %v1989_v53 = vpop.permute.xlu0 %1988 }
 0x369   :  { %v2446_v28 = vrot.slane %v1989_v53, %v3639_v48  ;;  %v2700_v53 = vsel %vm966_vm8, %v2294_v36, %v2699_v34  ;;  %v2366_v36 = vrot.slane %v4566_v46, %v3639_v48  ;;  %v2474_v46 = vrot.slane %v4544_v54, %v3639_v48 }
 0x36a   :  { %v2701_v0 = vsel %vm968_vm9, %v2298_v52, %v2700_v53  ;;  %v2426_v52 = vrot.slane %v4976_v45, %v3639_v48 }
 0x36b   :  { %v2734_v23 = vsel %vm964_vm7, %v2450_v18, %v2446_v28  ;;  %v4721_v28 = vpop.permute.xlu1 %2108  ;;  %v2702_v3 = vsel %vm2670_vm11, %v2302_v21, %v2701_v0  ;;  %v2422_v18 = vrot.slane %v4618_v56, %v3639_v48  ;;  %v2314_v21 = vrot.slane %v4373_v62, %v3639_v48 }
 0x36c   :  { %v1995_v14 = vpop.permute.xlu0 %1994  ;;  %v2703_v56 = vsel %vm2672_vm12, %v2306_v57, %v2702_v3  ;;  %v4979_v57 = vld [vmem:[#allocation23_spill] sm:$0xff] }
 0x36d   :  { %v2454_v29 = vrot.slane %v1995_v14, %v3639_v48  ;;  %v2418_v14 = vrot.slane %v4474_v47, %v3639_v48  ;;  %v2704_v60 = vsel %vm2674_vm13, %v2310_v4, %v2703_v56  ;;  %v2442_v27 = vrot.slane %v4979_v57, %v3639_v48 }
 0x36e   :  { %v2705_v62 = vsel %vm2676_vm14, %v2314_v21, %v2704_v60  ;;  %v2522_v21 = vrot.slane %v4590_v39, %v3639_v48  ;;  %v2574_v57 = vrot.slane %v4689_v49, %v3639_v48 }
 0x36f   :  { %v2735_v25 = vsel %vm966_vm8, %v2454_v29, %v2734_v23  ;;  %v2716_v29 = vsel %vm2670_vm11, %v2366_v36, %v2715_v12  ;;  %v2727_v43 = vsel %vm964_vm7, %v2418_v14, %v2414_v35  ;;  %v4757_v47 = vpop.permute.xlu1 %2132  ;;  %v2430_v23 = vrot.slane %v4630_v26, %v3639_v48 }
 0x370   :  { %v2001_v41 = vpop.permute.xlu0 %2000  ;;  %v2736_v55 = vsel %vm968_vm9, %v2458_v61, %v2735_v25  ;;  %v2728_v34 = vsel %vm966_vm8, %v2422_v18, %v2727_v43  ;;  %v2370_v25 = vrot.slane %v4975_v17, %v3639_v48 }
 0x371   :  { %v2462_v11 = vrot.slane %v2001_v41, %v3639_v48  ;;  %v2729_v26 = vsel %vm968_vm9, %v2426_v52, %v2728_v34 }
 0x372   :  { %v2717_v38 = vsel %vm2672_vm12, %v2370_v25, %v2716_v29 }
 0x373   :  { %v2737_v31 = vsel %vm2670_vm11, %v2462_v11, %v2736_v55  ;;  %v2730_v11 = vsel %vm2670_vm11, %v2430_v23, %v2729_v26  ;;  %v2718_v0 = vsel %vm2674_vm13, %v2374_v24, %v2717_v38  ;;  %v4977_v55 = vld [vmem:[#allocation20_spill] sm:$0xff]  ;;  %v4789_v3 = vpop.permute.xlu1 %2090  ;;  %v2514_v24 = vrot.slane %v4581_v10, %v3639_v48 }
 0x374   :  { %2801 = vadd.xlane.f32.xlu0 %v2800_v22  ;;  %v2007_v1 = vpop.permute.xlu0 %2006  ;;  %v2738_v51 = vsel %vm2672_vm12, %v2466_v20, %v2737_v31  ;;  %v2438_v22 = vrot.slane %v4641_v7, %v3639_v48  ;;  %v2378_v13 = vrot.slane %v4977_v55, %v3639_v48  ;;  %v2812_v31 = vsel %vm2799_vm15, %v2705_v62, 0.0 }
 0x375   :  { %v2470_v15 = vrot.slane %v2007_v1, %v3639_v48  ;;  %v2490_v7 = vrot.slane %v4563_v42, %v3639_v48  ;;  %v2731_v36 = vsel %vm2672_vm12, %v2434_v30, %v2730_v11  ;;  %v2498_v42 = vrot.slane %v4570_v59, %v3639_v48 }
 0x376   :  { %v2719_v63 = vsel %vm2676_vm14, %v2378_v13, %v2718_v0  ;;  %v2732_v1 = vsel %vm2674_vm13, %v2438_v22, %v2731_v36  ;;  %v2530_v10 = vrot.slane %v4601_v32, %v3639_v48  ;;  %v2538_v26 = vrot.slane %v4612_v50, %v3639_v48 }
 0x377   :  { %v2739_v6 = vsel %vm2674_vm13, %v2470_v15, %v2738_v51  ;;  %v2818_v14 = vsel %vm2799_vm15, %v2719_v63, 0.0  ;;  %v2733_v51 = vsel %vm2676_vm14, %v2442_v27, %v2732_v1  ;;  %v2546_v32 = vrot.slane %v4628_v40, %v3639_v48 }
 0x378   :  { %2807 = vadd.xlane.f32.xlu0 %v2806_v16  ;;  %v2013_v54 = vpop.permute.xlu0 %2012  ;;  %v2740_v37 = vsel %vm2676_vm14, %v2474_v46, %v2739_v6  ;;  %v4807_v46 = vpop.permute.xlu1 %2138  ;;  %v2506_v6 = vrot.slane %v4576_v2, %v3639_v48  ;;  %v2824_v56 = vsel %vm2799_vm15, %v2733_v51, 0.0  ;;  %v2554_v13 = vrot.slane %v4656_v19, %v3639_v48 }
 0x379   :  { %v2827_v53 = vsel %vm2799_vm15, %v2740_v37, 0.0  ;;  %v2478_v61 = vrot.slane %v2013_v54, %v3639_v48 }
 0x37a   :  { %2828 = vadd.xlane.f32.xlu1 %v2827_v53 }
 0x37b   :  { %v2741_v4 = vsel %vm964_vm7, %v2482_v44, %v2478_v61 }
 0x37c   :  { %2810 = vadd.xlane.f32.xlu0 %v2809_v58  ;;  %v2019_v41 = vpop.permute.xlu0 %2018  ;;  %v4817_v54 = vpop.permute.xlu1 %2117 }
 0x37d   :  { %v2486_v8 = vrot.slane %v2019_v41, %v3639_v48 }
 0x37f   :  { %v2742_v5 = vsel %vm966_vm8, %v2486_v8, %v2741_v4 }
 0x380   :  { %2813 = vadd.xlane.f32.xlu0 %v2812_v31  ;;  %v2025_v20 = vpop.permute.xlu0 %2024  ;;  %v2743_v18 = vsel %vm968_vm9, %v2490_v7, %v2742_v5  ;;  %v2097_v17 = vpop.permute.xlu1 %2096 }
 0x381   :  { %v2494_v35 = vrot.slane %v2025_v20, %v3639_v48  ;;  %v2590_v51 = vrot.slane %v2097_v17, %v3639_v48 }
 0x383   :  { %v2744_v15 = vsel %vm2670_vm11, %v2494_v35, %v2743_v18  ;;  %v2582_v18 = vrot.slane %v4789_v3, %v3639_v48  ;;  %v2646_v3 = vrot.slane %v4807_v46, %v3639_v48 }
 0x384   :  { %2819 = vadd.xlane.f32.xlu0 %v2818_v14  ;;  %v2031_v16 = vpop.permute.xlu0 %2030  ;;  %v2745_v9 = vsel %vm2672_vm12, %v2498_v42, %v2744_v15  ;;  %v2145_v41 = vpop.permute.xlu1 %2144  ;;  %v2638_v42 = vrot.slane %v4757_v47, %v3639_v48 }
 0x385   :  { %v2502_v12 = vrot.slane %v2031_v16, %v3639_v48 }
 0x387   :  { %v2746_v29 = vsel %vm2674_vm13, %v2502_v12, %v2745_v9 }
 0x388   :  { %2825 = vadd.xlane.f32.xlu0 %v2824_v56  ;;  %v2037_v43 = vpop.permute.xlu0 %2036  ;;  %v2747_v59 = vsel %vm2676_vm14, %v2506_v6, %v2746_v29  ;;  %v2100_v0 = vpop.permute.xlu1 %2099 }
 0x389   :  { %v2510_v37 = vrot.slane %v2037_v43, %v3639_v48  ;;  %v2830_v60 = vsel %vm2799_vm15, %v2747_v59, 0.0  ;;  %v2594_v49 = vrot.slane %v2100_v0, %v3639_v48 }
 0x38b   :  { %v2748_v23 = vsel %vm964_vm7, %v2514_v24, %v2510_v37 }
 0x38c   :  { %2831 = vadd.xlane.f32.xlu0 %v2830_v60  ;;  %v2043_v2 = vpop.permute.xlu0 %2042  ;;  %v2148_v31 = vpop.permute.xlu1 %2147  ;;  %v2654_v60 = vrot.slane %v2145_v41, %v3639_v48 }
 0x38d   :  { %v2518_v34 = vrot.slane %v2043_v2, %v3639_v48  ;;  %v2658_v46 = vrot.slane %v2148_v31, %v3639_v48 }
 0x38f   :  { %v2749_v53 = vsel %vm966_vm8, %v2518_v34, %v2748_v23 }
 0x390   :  { %v2049_v25 = vpop.permute.xlu0 %2048  ;;  %v2750_v52 = vsel %vm968_vm9, %v2522_v21, %v2749_v53  ;;  %v2103_v20 = vpop.permute.xlu1 %2102 }
 0x391   :  { %v2526_v45 = vrot.slane %v2049_v25, %v3639_v48  ;;  %v2598_v56 = vrot.slane %v2103_v20, %v3639_v48 }
 0x393   :  { %v2751_v61 = vsel %vm2670_vm11, %v2526_v45, %v2750_v52 }
 0x394   :  { %v2055_v58 = vpop.permute.xlu0 %2054  ;;  %v2752_v39 = vsel %vm2672_vm12, %v2530_v10, %v2751_v61  ;;  %v2151_v40 = vpop.permute.xlu1 %2150 }
 0x395   :  { %v2534_v44 = vrot.slane %v2055_v58, %v3639_v48  ;;  %v2662_v21 = vrot.slane %v2151_v40, %v3639_v48 }
 0x397   :  { %v2753_v62 = vsel %vm2674_vm13, %v2534_v44, %v2752_v39 }
 0x398   :  { %v2061_v38 = vpop.permute.xlu0 %2060  ;;  %v2754_v11 = vsel %vm2676_vm14, %v2538_v26, %v2753_v62  ;;  %v2106_v15 = vpop.permute.xlu1 %2105 }
 0x399   :  { %v2833_v22 = vsel %vm2799_vm15, %v2754_v11, 0.0  ;;  %v2542_v8 = vrot.slane %v2061_v38, %v3639_v48  ;;  %v2602_v43 = vrot.slane %v2106_v15, %v3639_v48 }
 0x39a   :  { %2834 = vadd.xlane.f32.xlu1 %v2833_v22 }
 0x39b   :  { %v2755_v33 = vsel %vm964_vm7, %v2546_v32, %v2542_v8  ;;  %v2606_v8 = vrot.slane %v4721_v28, %v3639_v48  ;;  %v2618_v28 = vrot.slane %v4817_v54, %v3639_v48 }
 0x39c   :  { %v2067_v55 = vpop.permute.xlu0 %2066  ;;  %v2154_v24 = vpop.permute.xlu1 %2153 }
 0x39d   :  { %v2550_v50 = vrot.slane %v2067_v55, %v3639_v48  ;;  %v2666_v52 = vrot.slane %v2154_v24, %v3639_v48 }
 0x39f   :  { %v2756_v30 = vsel %vm966_vm8, %v2550_v50, %v2755_v33  ;;  %v3166_v50 = vld [vmem:[%s4944_s4] ss:$0 sm:$0xff]  ;;  %s3322_s4 = smov [#allocation5]  }
 0x3a0   :  { %v2757_v4 = vsel %vm968_vm9, %v2554_v13, %v2756_v30  ;;  %v2073_v5 = vpop.permute.xlu0 %2072  ;;  %s3153_s25 = sshll.u32 %s3322_s4, 4  ;;  %s3154_s25 = int_to_ptr.vmem [resolvable:$true] %s3153_s25 }
 0x3a1   :  { %v2558_v38 = vrot.slane %v2073_v5, %v3639_v48  ;;  %s3292_s26 = scalar_lea.vmem %s3154_s25, 4096  ;;  %p3297_p9 = scmp.lt.s32.totalorder %s3154_s25, %s3154_s25 }
 0x3a2   :  { %p3293_p8 = scmp.ne.s32.totalorder %s3154_s25, %s3292_s26  ;;  %p3298_p10 = scmp.lt.s32.totalorder %s3292_s26, %s3292_s26 }
 0x3a3   :  { %v2758_v13 = vsel %vm2670_vm11, %v2558_v38, %v2757_v4 }
 0x3a4   :  { %v2088_v7 = vpop.permute.xlu0 %2087  ;;  %p3299_p11 = por %p3298_p10, %p3297_p9 }
 0x3a5   :  { %v2578_v35 = vrot.slane %v2088_v7, %v3639_v48 }
 0x3a6   :  { %p3300_p12 = pnand %p3299_p11, %p3293_p8 }
 0x3a7   :  { %v2762_v19 = vsel %vm964_vm7, %v2578_v35, %v2574_v57 }
 0x3a8   :  { %v2112_v63 = vpop.permute.xlu0 %2111  ;;  %v2763_v12 = vsel %vm966_vm8, %v2582_v18, %v2762_v19 }
 0x3a9   :  { %v2610_v62 = vrot.slane %v2112_v63, %v3639_v48 }
 0x3ab   :  { %v2769_v55 = vsel %vm964_vm7, %v2610_v62, %v2606_v8 }
 0x3ac   :  { %v2136_v36 = vpop.permute.xlu0 %2135 }
 0x3ad   :  { %v2642_v27 = vrot.slane %v2136_v36, %v3639_v48 }
 0x3af   :  { %v2776_v6 = vsel %vm964_vm7, %v2642_v27, %v2638_v42 }
 0x3b0   :  { %v2115_v1 = vpop.permute.xlu0 %2114  ;;  %v2777_v2 = vsel %vm966_vm8, %v2646_v3, %v2776_v6 }
 0x3b1   :  { %v2614_v11 = vrot.slane %v2115_v1, %v3639_v48 }
 0x3b3   :  { %v2770_v33 = vsel %vm966_vm8, %v2614_v11, %v2769_v55 }
 0x3b4   :  { %v2094_v14 = vpop.permute.xlu0 %2093  ;;  %v2771_v4 = vsel %vm968_vm9, %v2618_v28, %v2770_v33 }
 0x3b5   :  { %v2586_v16 = vrot.slane %v2094_v14, %v3639_v48 }
 0x3b7   :  { %v2764_v9 = vsel %vm968_vm9, %v2586_v16, %v2763_v12 }
 0x3b8   :  { %v2765_v29 = vsel %vm2670_vm11, %v2590_v51, %v2764_v9  ;;  %v2142_v47 = vpop.permute.xlu0 %2141 }
 0x3b9   :  { %v2650_v59 = vrot.slane %v2142_v47, %v3639_v48  ;;  %v2766_v37 = vsel %vm2672_vm12, %v2594_v49, %v2765_v29 }
 0x3ba   :  { %v2767_v34 = vsel %vm2674_vm13, %v2598_v56, %v2766_v37 }
 0x3bb   :  { %v2778_v23 = vsel %vm968_vm9, %v2650_v59, %v2777_v2  ;;  %v2768_v53 = vsel %vm2676_vm14, %v2602_v43, %v2767_v34 }
 0x3bc   :  { %v2779_v17 = vsel %vm2670_vm11, %v2654_v60, %v2778_v23  ;;  %v2121_v25 = vpop.permute.xlu0 %2120  ;;  %v2839_v45 = vsel %vm2799_vm15, %v2768_v53, 0.0 }
 0x3bd   :  { %2840 = vadd.xlane.f32.xlu1 %v2839_v45  ;;  %v2780_v61 = vsel %vm2672_vm12, %v2658_v46, %v2779_v17  ;;  %v2622_v30 = vrot.slane %v2121_v25, %v3639_v48 }
 0x3be   :  { %v2781_v10 = vsel %vm2674_vm13, %v2662_v21, %v2780_v61 }
 0x3bf   :  { %v2782_v58 = vsel %vm2676_vm14, %v2666_v52, %v2781_v10  ;;  %v2772_v35 = vsel %vm2670_vm11, %v2622_v30, %v2771_v4 }
 0x3c0   :  { %v2076_v44 = vpop.permute.xlu0 %2075  ;;  %v2845_v26 = vsel %vm2799_vm15, %v2782_v58, 0.0 }
 0x3c1   :  { %2846 = vadd.xlane.f32.xlu1 %v2845_v26  ;;  %v2562_v32 = vrot.slane %v2076_v44, %v3639_v48 }
 0x3c3   :  { %v2759_v31 = vsel %vm2672_vm12, %v2562_v32, %v2758_v13 }
 0x3c4   :  { %v2124_v41 = vpop.permute.xlu0 %2123 }
 0x3c5   :  { %v2626_v7 = vrot.slane %v2124_v41, %v3639_v48 }
 0x3c7   :  { %v2773_v57 = vsel %vm2672_vm12, %v2626_v7, %v2772_v35 }
 0x3c8   :  { %v2079_v39 = vpop.permute.xlu0 %2078 }
 0x3c9   :  { %v2566_v0 = vrot.slane %v2079_v39, %v3639_v48 }
 0x3cb   :  { %v2760_v36 = vsel %vm2674_vm13, %v2566_v0, %v2759_v31 }
 0x3cc   :  { %v2127_v22 = vpop.permute.xlu0 %2126  ;;  %v2805_v14 = vpop.xlane.xlu1 %2804 }
 0x3cd   :  { %v2630_v63 = vrot.slane %v2127_v22, %v3639_v48 }
 0x3cf   :  { %v2774_v27 = vsel %vm2674_vm13, %v2630_v63, %v2773_v57 }
 0x3d0   :  { %v2082_v5 = vpop.permute.xlu0 %2081  ;;  %v2817_v42 = vpop.xlane.xlu1 %2816 }
 0x3d1   :  { %v2570_v20 = vrot.slane %v2082_v5, %v3639_v48 }
 0x3d2   :  { %2858 = vbcast.lane.b32.xlu1 %v3166_v50, 264 }
 0x3d3   :  { %v2761_v40 = vsel %vm2676_vm14, %v2570_v20, %v2760_v36 }
 0x3d4   :  { %v2130_v1 = vpop.permute.xlu0 %2129  ;;  %v2836_v54 = vsel %vm2799_vm15, %v2761_v40, 0.0 }
 0x3d5   :  { %v2634_v19 = vrot.slane %v2130_v1, %v3639_v48  ;;  %2837 = vadd.xlane.f32.xlu0 %v2836_v54 }
 0x3d6   :  { %2862 = vbcast.lane.b32.xlu1 %v3166_v50, 272 }
 0x3d7   :  { %v2775_v18 = vsel %vm2676_vm14, %v2634_v19, %v2774_v27 }
 0x3d8   :  { %v2842_v15 = vsel %vm2799_vm15, %v2775_v18, 0.0 }
 0x3d9   :  { %2843 = vadd.xlane.f32.xlu0 %v2842_v15 }
 0x3da   :  { %2866 = vbcast.lane.b32.xlu1 %v3166_v50, 280 }
 0x3de   :  { %2874 = vbcast.lane.b32.xlu1 %v3166_v50, 296 }
 0x3e2   :  { %2882 = vbcast.lane.b32.xlu1 %v3166_v50, 312 }
 0x3e7   :  { %v2823_v51 = vpop.xlane.xlu1 %2822 }
 0x3ef   :  { %2854 = vbcast.lane.b32.xlu0 %v3166_v50, 256 }
 0x3f3   :  { %2870 = vbcast.lane.b32.xlu0 %v3166_v50, 288 }
 0x3f7   :  { %2878 = vbcast.lane.b32.xlu0 %v3166_v50, 304 }
 0x401   :  { %v2802_v16 = vpop.xlane.xlu0 %2801 }
 0x405   :  { %v2808_v48 = vpop.xlane.xlu0 %2807 }
 0x407   :  { %v2829_v12 = vpop.xlane.xlu1 %2828 }
 0x409   :  { %v2811_v49 = vpop.xlane.xlu0 %2810 }
 0x40d   :  { %v2814_v3 = vpop.xlane.xlu0 %2813 }
 0x411   :  { %v4915_v29 = vpop.xlane.xlu0 %2819 }
 0x415   :  { %v2826_v24 = vpop.xlane.xlu0 %2825 }
 0x419   :  { %v2832_v53 = vpop.xlane.xlu0 %2831 }
 0x427   :  { %v2835_v6 = vpop.xlane.xlu1 %2834 }
 0x44a   :  { %v2841_v9 = vpop.xlane.xlu1 %2840 }
 0x44e   :  { %v2847_v56 = vpop.xlane.xlu1 %2846 }
 0x452   :  { %v2859_v47 = vpop.permute.xlu1 %2858 }
 0x453   :  { %v2893_v43 = vadd.f32 %v2859_v47, %v2805_v14  ;;  %v2901_v46 = vadd.f32 %v2859_v47, %v2829_v12 }
 0x455   :  { %v2909_v59 = vsub.f32 0.0, %v2893_v43  ;;  %v2917_v52 = vsub.f32 0.0, %v2901_v46 }
 0x456   :  { %v4917_v37 = vpop.permute.xlu1 %2862 }
 0x457   :  { %v2926_v60 = vmul.f32 1.442695, %v2909_v59  ;;  %v2894_v26 = vadd.f32 %v4917_v37, %v2808_v48  ;;  %v2942_v38 = vmul.f32 1.442695, %v2917_v52  ;;  %v2902_v48 = vadd.f32 %v4917_v37, %v2832_v53 }
 0x459   :  { %3174 = vpow2.f32 %v2926_v60  ;;  %v2910_v0 = vsub.f32 0.0, %v2894_v26  ;;  %v2918_v43 = vsub.f32 0.0, %v2902_v48 }
 0x45a   :  { %v2867_v2 = vpop.permute.xlu1 %2866 }
 0x45b   :  { %v2895_v34 = vadd.f32 %v2867_v2, %v2811_v49  ;;  %v2903_v17 = vadd.f32 %v2867_v2, %v2835_v6  ;;  %v2928_v28 = vmul.f32 1.442695, %v2910_v0  ;;  %v2944_v46 = vmul.f32 1.442695, %v2918_v43 }
 0x45d   :  { %v2911_v23 = vsub.f32 0.0, %v2895_v34  ;;  %v2919_v41 = vsub.f32 0.0, %v2903_v17 }
 0x45e   :  { %v2875_v21 = vpop.permute.xlu1 %2874 }
 0x45f   :  { %v2930_v25 = vmul.f32 1.442695, %v2911_v23  ;;  %v2897_v45 = vadd.f32 %v2875_v21, %v2817_v42  ;;  %v2905_v22 = vadd.f32 %v2875_v21, %v2841_v9  ;;  %v2946_v55 = vmul.f32 1.442695, %v2919_v41 }
 0x461   :  { %3176 = vpow2.f32 %v2930_v25  ;;  %v2913_v61 = vsub.f32 0.0, %v2897_v45  ;;  %v2921_v13 = vsub.f32 0.0, %v2905_v22 }
 0x462   :  { %v2883_v10 = vpop.permute.xlu1 %2882  ;;  %v2838_v58 = vpop.xlane.xlu0 %2837 }
 0x463   :  { %v3175_v44 = vpop.eup %3174  ;;  %v2934_v39 = vmul.f32 1.442695, %v2913_v61  ;;  %v2899_v62 = vadd.f32 %v2883_v10, %v2823_v51  ;;  %v2907_v33 = vadd.f32 %v2883_v10, %v2847_v56  ;;  %v2950_v20 = vmul.f32 1.442695, %v2921_v13 }
 0x464   :  { %v2957_v11 = vadd.f32 1.0, %v3175_v44 }
 0x465   :  { %3178 = vpow2.f32 %v2934_v39  ;;  %v2915_v8 = vsub.f32 0.0, %v2899_v62  ;;  %v2923_v63 = vsub.f32 0.0, %v2907_v33 }
 0x466   :  { %3180 = vrcp.f32 %v2957_v11  ;;  %v4920_v32 = vpop.xlane.xlu0 %2843 }
 0x467   :  { %v2938_v50 = vmul.f32 1.442695, %v2915_v8  ;;  %3182 = vpow2.f32 %v2942_v38  ;;  %v2954_v19 = vmul.f32 1.442695, %v2923_v63 }
 0x469   :  { %3184 = vpow2.f32 %v2938_v50 }
 0x46a   :  { %v2855_v30 = vpop.permute.xlu0 %2854  ;;  %3186 = vpow2.f32 %v2946_v55 }
 0x46b   :  { %v3177_v5 = vpop.eup %3176  ;;  %v2892_v31 = vadd.f32 %v2855_v30, %v2802_v16  ;;  %v2900_v27 = vadd.f32 %v2855_v30, %v2826_v24 }
 0x46c   :  { %v2959_v7 = vadd.f32 1.0, %v3177_v5 }
 0x46d   :  { %v2908_v36 = vsub.f32 0.0, %v2892_v31  ;;  %v2916_v9 = vsub.f32 0.0, %v2900_v27 }
 0x46e   :  { %3188 = vrcp.f32 %v2959_v7  ;;  %v2871_v4 = vpop.permute.xlu0 %2870 }
 0x46f   :  { %v3179_v40 = vpop.eup %3178  ;;  %3190 = vpow2.f32 %v2928_v28  ;;  %v2924_v35 = vmul.f32 1.442695, %v2908_v36  ;;  %v2896_v1 = vadd.f32 %v2871_v4, %v2814_v3  ;;  %v2904_v60 = vadd.f32 %v2871_v4, %v2838_v58 }
 0x470   :  { %v3181_v54 = vpop.eup %3180  ;;  %3192 = vpow2.f32 %v2950_v20  ;;  %v2961_v57 = vadd.f32 1.0, %v3179_v40  ;;  %v2940_v2 = vmul.f32 1.442695, %v2916_v9  ;;  %v3244_v9 = vld [vmem:[#allocation2 + $0x70] sm:$0xff] }
 0x471   :  { %3194 = vpow2.f32 %v2924_v35  ;;  %v2912_v18 = vsub.f32 0.0, %v2896_v1  ;;  %3011 = vperm.xlu1 %3173, %v3181_v54   ;;  %v3183_v15 = vpop.eup %3182  ;;  %v2920_v53 = vsub.f32 0.0, %v2904_v60  ;;  %v3238_v1 = vld [vmem:[#allocation2 + $0x10] sm:$0xff] }
 0x472   :  { %3196 = vrcp.f32 %v2961_v57  ;;  %v2879_v14 = vpop.permute.xlu0 %2878  ;;  %v2965_v6 = vadd.f32 1.0, %v3183_v15  ;;  %v3239_v57 = vld [vmem:[#allocation2 + $0x18] sm:$0xff] }
 0x473   :  { %v3185_v42 = vpop.eup %3184  ;;  %v2932_v16 = vmul.f32 1.442695, %v2912_v18  ;;  %v2898_v51 = vadd.f32 %v2879_v14, %v4915_v29  ;;  %3198 = vpow2.f32 %v2954_v19  ;;  %v2906_v17 = vadd.f32 %v2879_v14, %v4920_v32  ;;  %v3240_v18 = vld [vmem:[#allocation2 + $0x30] sm:$0xff]  ;;  %v3241_v14 = vld [vmem:[#allocation2 + $0x38] sm:$0xff] }
 0x474   :  { %v2963_v12 = vadd.f32 1.0, %v3185_v42  ;;  %v3187_v49 = vpop.eup %3186  ;;  %v2948_v61 = vmul.f32 1.442695, %v2920_v53 }
 0x475   :  { %v2914_v3 = vsub.f32 0.0, %v2898_v51  ;;  %v2967_v59 = vadd.f32 1.0, %v3187_v49  ;;  %v2922_v44 = vsub.f32 0.0, %v2906_v17  ;;  %v3242_v51 = vld [vmem:[#allocation2 + $0x50] sm:$0xff] }
 0x476   :  { %3200 = vrcp.f32 %v2963_v12  ;;  %v3243_v12 = vld [vmem:[#allocation2 + $0x58] sm:$0xff] }
 0x477   :  { %3202 = vpow2.f32 %v2932_v16  ;;  %v2936_v56 = vmul.f32 1.442695, %v2914_v3  ;;  %v2952_v62 = vmul.f32 1.442695, %v2922_v44  ;;  %v3253_v44 = vld [vmem:[#allocation2 + $0xd8] sm:$0xff] }
 0x478   :  { %v3189_v47 = vpop.eup %3188  ;;  %3204 = vrcp.f32 %v2965_v6 }
 0x479   :  { %v3191_v24 = vpop.eup %3190  ;;  %3021 = vperm.xlu1 %3173, %v3189_v47   ;;  %3206 = vpow2.f32 %v2936_v56  ;;  %v3245_v56 = vld [vmem:[#allocation2 + $0x78] sm:$0xff] }
 0x47a   :  { %v3193_v29 = vpop.eup %3192  ;;  %3208 = vrcp.f32 %v2967_v59  ;;  %v2958_v21 = vadd.f32 1.0, %v3191_v24  ;;  %v3246_v59 = vld [vmem:[#allocation2 + $0x90] sm:$0xff]  ;;  %v3247_v24 = vld [vmem:[#allocation2 + $0x98] sm:$0xff] }
 0x47b   :  { %v3195_v37 = vpop.eup %3194  ;;  %3210 = vpow2.f32 %v2940_v2  ;;  %v2969_v45 = vadd.f32 1.0, %v3193_v29 }
 0x47c   :  { %v3197_v34 = vpop.eup %3196  ;;  %v2956_v23 = vadd.f32 1.0, %v3195_v37 }
 0x47d   :  { %3031 = vperm.xlu1 %3173, %v3197_v34   ;;  %v3199_v25 = vpop.eup %3198  ;;  %v3248_v34 = vld [vmem:[#allocation2 + $0xb0] sm:$0xff] }
 0x47e   :  { %3212 = vrcp.f32 %v2956_v23  ;;  %v2971_v58 = vadd.f32 1.0, %v3199_v25  ;;  %v3249_v23 = vld [vmem:[#allocation2 + $0xb8] sm:$0xff]  ;;  %v3251_v25 = vld [vmem:[#allocation2 + $0x8] sm:$0xff] }
 0x47f   :  { %3214 = vpow2.f32 %v2944_v46 }
 0x480   :  { %v3201_v52 = vpop.eup %3200  ;;  %3216 = vrcp.f32 %v2958_v21  ;;  %v3250_v21 = vld [vmem:[#allocation2] sm:$0xff] }
 0x481   :  { %v3203_v10 = vpop.eup %3202  ;;  %3041 = vperm.xlu1 %3173, %v3201_v52   ;;  %3218 = vrcp.f32 %v2969_v45 }
 0x482   :  { %v2960_v26 = vadd.f32 1.0, %v3203_v10  ;;  %v3205_v41 = vpop.eup %3204  ;;  %3220 = vpow2.f32 %v2948_v61  ;;  %v3252_v10 = vld [vmem:[#allocation2 + $0xd0] sm:$0xff] }
 0x483   :  { %v3207_v39 = vpop.eup %3206  ;;  %3222 = vrcp.f32 %v2971_v58 }
 0x484   :  { %v3209_v38 = vpop.eup %3208  ;;  %3224 = vrcp.f32 %v2960_v26  ;;  %v2962_v11 = vadd.f32 1.0, %v3207_v39 }
 0x485   :  { %3051 = vperm.xlu1 %3173, %v3205_v41   ;;  %v3211_v22 = vpop.eup %3210  ;;  %3226 = vpow2.f32 %v2952_v62  ;;  %v3254_v41 = vld [vmem:[#allocation2 + $0x20] sm:$0xff]  ;;  %v3255_v62 = vld [vmem:[#allocation2 + $0x28] sm:$0xff] }
 0x486   :  { %v2964_v0 = vadd.f32 1.0, %v3211_v22  ;;  %3228 = vrcp.f32 %v2962_v11 }
 0x488   :  { %v3213_v8 = vpop.eup %3212  ;;  %3230 = vrcp.f32 %v2964_v0  ;;  %v3257_v0 = vld [vmem:[#allocation2 + $0xf8] sm:$0xff] }
 0x489   :  { %3061 = vperm.xlu1 %3173, %v3209_v38   ;;  %3006 = vperm.xlu0 %3172, %v3213_v8   ;;  %v3215_v32 = vpop.eup %3214  ;;  %v3256_v8 = vld [vmem:[#allocation2 + $0xf0] sm:$0xff] }
 0x48a   :  { %v3217_v55 = vpop.eup %3216  ;;  %v2966_v33 = vadd.f32 1.0, %v3215_v32 }
 0x48b   :  { %v3219_v50 = vpop.eup %3218 }
 0x48c   :  { %v3221_v13 = vpop.eup %3220  ;;  %3232 = vrcp.f32 %v2966_v33  ;;  %v3259_v33 = vld [vmem:[#allocation2 + $0x48] sm:$0xff] }
 0x48d   :  { %3071 = vperm.xlu1 %3173, %v3219_v50   ;;  %3016 = vperm.xlu0 %3172, %v3217_v55   ;;  %v3223_v30 = vpop.eup %3222  ;;  %v2968_v28 = vadd.f32 1.0, %v3221_v13  ;;  %v3258_v50 = vld [vmem:[#allocation2 + $0x40] sm:$0xff] }
 0x48e   :  { %v3225_v5 = vpop.eup %3224 }
 0x48f   :  { %v3227_v31 = vpop.eup %3226  ;;  %3234 = vrcp.f32 %v2968_v28  ;;  %v3260_v28 = vld [vmem:[#allocation2 + $0x60] sm:$0xff] }
 0x490   :  { %v3229_v7 = vpop.eup %3228  ;;  %v2970_v20 = vadd.f32 1.0, %v3227_v31 }
 0x491   :  { %3081 = vperm.xlu1 %3173, %v3223_v30   ;;  %3026 = vperm.xlu0 %3172, %v3225_v5  }
 0x492   :  { %v3231_v63 = vpop.eup %3230  ;;  %3236 = vrcp.f32 %v2970_v20 }
 0x495   :  { %3036 = vperm.xlu0 %3172, %v3229_v7   ;;  %v3261_v7 = vld [vmem:[#allocation2 + $0x68] sm:$0xff] }
 0x496   :  { %v3233_v36 = vpop.eup %3232 }
 0x499   :  { %3046 = vperm.xlu0 %3172, %v3231_v63   ;;  %v3235_v4 = vpop.eup %3234 }
 0x49c   :  { %v3237_v40 = vpop.eup %3236 }
 0x49d   :  { %3056 = vperm.xlu0 %3172, %v3233_v36   ;;  %v3262_v36 = vld [vmem:[#allocation2 + $0x80] sm:$0xff] }
 0x4a1   :  { %3066 = vperm.xlu0 %3172, %v3235_v4  }
 0x4a5   :  { %3076 = vperm.xlu0 %3172, %v3237_v40   ;;  %v3263_v40 = vld [vmem:[#allocation2 + $0x88] sm:$0xff] }
 0x4f0   :  { %v3012_v35 = vpop.permute.xlu1 %3011 }
 0x4f1   :  { %v3086_v54 = vmul.f32 %v3238_v1, %v3012_v35  ;;  %v3087_v19 = vmul.f32 %v3239_v57, %v3012_v35 }
 0x4f3   :  { %3118 = vst [vmem:[#allocation5 + $0x10] sm:$0xff] %v3086_v54  ;;  %3119 = vst [vmem:[#allocation5 + $0x18] sm:$0xff] %v3087_v19  ;;  %v3264_v54 = vld [vmem:[#allocation2 + $0xa0] sm:$0xff]  ;;  %v3265_v19 = vld [vmem:[#allocation2 + $0xa8] sm:$0xff] }
 0x4f8   :  { %v3022_v27 = vpop.permute.xlu1 %3021 }
 0x4f9   :  { %v3090_v15 = vmul.f32 %v3240_v18, %v3022_v27  ;;  %v3091_v42 = vmul.f32 %v3241_v14, %v3022_v27 }
 0x4fb   :  { %3122 = vst [vmem:[#allocation5 + $0x30] sm:$0xff] %v3090_v15  ;;  %3123 = vst [vmem:[#allocation5 + $0x38] sm:$0xff] %v3091_v42  ;;  %v3266_v15 = vld [vmem:[#allocation2 + $0xc0] sm:$0xff]  ;;  %v3267_v42 = vld [vmem:[#allocation2 + $0xc8] sm:$0xff] }
 0x4fc   :  { %v3032_v16 = vpop.permute.xlu1 %3031 }
 0x4fd   :  { %v3094_v48 = vmul.f32 %v3242_v51, %v3032_v16  ;;  %v3095_v49 = vmul.f32 %v3243_v12, %v3032_v16 }
 0x4ff   :  { %3126 = vst [vmem:[#allocation5 + $0x50] sm:$0xff] %v3094_v48  ;;  %3127 = vst [vmem:[#allocation5 + $0x58] sm:$0xff] %v3095_v49  ;;  %v3268_v48 = vld [vmem:[#allocation2 + $0xe0] sm:$0xff]  ;;  %v3269_v49 = vld [vmem:[#allocation2 + $0xe8] sm:$0xff] }
 0x500   :  { %v3042_v6 = vpop.permute.xlu1 %3041 }
 0x501   :  { %v3098_v3 = vmul.f32 %v3244_v9, %v3042_v6  ;;  %v3099_v47 = vmul.f32 %v3245_v56, %v3042_v6 }
 0x503   :  { %3130 = vst [vmem:[#allocation5 + $0x70] sm:$0xff] %v3098_v3  ;;  %3131 = vst [vmem:[#allocation5 + $0x78] sm:$0xff] %v3099_v47 }
 0x504   :  { %v3052_v43 = vpop.permute.xlu1 %3051 }
 0x505   :  { %v3102_v60 = vmul.f32 %v3246_v59, %v3052_v43  ;;  %v3103_v2 = vmul.f32 %v3247_v24, %v3052_v43 }
 0x507   :  { %3134 = vst [vmem:[#allocation5 + $0x90] sm:$0xff] %v3102_v60  ;;  %3135 = vst [vmem:[#allocation5 + $0x98] sm:$0xff] %v3103_v2 }
 0x508   :  { %v3062_v29 = vpop.permute.xlu1 %3061  ;;  %v3007_v37 = vpop.permute.xlu0 %3006 }
 0x509   :  { %v3106_v46 = vmul.f32 %v3248_v34, %v3062_v29  ;;  %v3107_v53 = vmul.f32 %v3249_v23, %v3062_v29  ;;  %v3084_v17 = vmul.f32 %v3250_v21, %v3007_v37  ;;  %v3085_v45 = vmul.f32 %v3251_v25, %v3007_v37 }
 0x50b   :  { %3138 = vst [vmem:[#allocation5 + $0xb0] sm:$0xff] %v3106_v46  ;;  %3139 = vst [vmem:[#allocation5 + $0xb8] sm:$0xff] %v3107_v53 }
 0x50c   :  { %3116 = vst [vmem:[#allocation5] sm:$0xff] %v3084_v17  ;;  %3117 = vst [vmem:[#allocation5 + $0x8] sm:$0xff] %v3085_v45  ;;  %v3072_v52 = vpop.permute.xlu1 %3071  ;;  %v3017_v61 = vpop.permute.xlu0 %3016 }
 0x50d   :  { %v3110_v58 = vmul.f32 %v3252_v10, %v3072_v52  ;;  %v3111_v26 = vmul.f32 %v3253_v44, %v3072_v52  ;;  %v3088_v39 = vmul.f32 %v3254_v41, %v3017_v61  ;;  %v3089_v38 = vmul.f32 %v3255_v62, %v3017_v61 }
 0x50f   :  { %3142 = vst [vmem:[#allocation5 + $0xd0] sm:$0xff] %v3110_v58  ;;  %3143 = vst [vmem:[#allocation5 + $0xd8] sm:$0xff] %v3111_v26 }
 0x510   :  { %3120 = vst [vmem:[#allocation5 + $0x20] sm:$0xff] %v3088_v39  ;;  %3121 = vst [vmem:[#allocation5 + $0x28] sm:$0xff] %v3089_v38  ;;  %v3082_v11 = vpop.permute.xlu1 %3081  ;;  %v3027_v22 = vpop.permute.xlu0 %3026 }
 0x511   :  { %v3114_v32 = vmul.f32 %v3256_v8, %v3082_v11  ;;  %v3115_v55 = vmul.f32 %v3257_v0, %v3082_v11  ;;  %v3092_v13 = vmul.f32 %v3258_v50, %v3027_v22  ;;  %v3093_v30 = vmul.f32 %v3259_v33, %v3027_v22 }
 0x513   :  { %3146 = vst [vmem:[#allocation5 + $0xf0] sm:$0xff] %v3114_v32  ;;  %3147 = vst [vmem:[#allocation5 + $0xf8] sm:$0xff] %v3115_v55 }
 0x514   :  { %3124 = vst [vmem:[#allocation5 + $0x40] sm:$0xff] %v3092_v13  ;;  %3125 = vst [vmem:[#allocation5 + $0x48] sm:$0xff] %v3093_v30  ;;  %v3037_v5 = vpop.permute.xlu0 %3036 }
 0x515   :  { %v3096_v31 = vmul.f32 %v3260_v28, %v3037_v5  ;;  %v3097_v20 = vmul.f32 %v3261_v7, %v3037_v5 }
 0x517   :  { %3128 = vst [vmem:[#allocation5 + $0x60] sm:$0xff] %v3096_v31  ;;  %3129 = vst [vmem:[#allocation5 + $0x68] sm:$0xff] %v3097_v20 }
 0x518   :  { %v3047_v63 = vpop.permute.xlu0 %3046 }
 0x519   :  { %v3100_v4 = vmul.f32 %v3262_v36, %v3047_v63  ;;  %v3101_v35 = vmul.f32 %v3263_v40, %v3047_v63 }
 0x51b   :  { %3132 = vst [vmem:[#allocation5 + $0x80] sm:$0xff] %v3100_v4  ;;  %3133 = vst [vmem:[#allocation5 + $0x88] sm:$0xff] %v3101_v35 }
 0x51c   :  { %v3057_v1 = vpop.permute.xlu0 %3056 }
 0x51d   :  { %v3104_v57 = vmul.f32 %v3264_v54, %v3057_v1  ;;  %v3105_v27 = vmul.f32 %v3265_v19, %v3057_v1 }
 0x51f   :  { %3136 = vst [vmem:[#allocation5 + $0xa0] sm:$0xff] %v3104_v57  ;;  %3137 = vst [vmem:[#allocation5 + $0xa8] sm:$0xff] %v3105_v27 }
 0x520   :  { %v3067_v18 = vpop.permute.xlu0 %3066 }
 0x521   :  { %v3108_v14 = vmul.f32 %v3266_v15, %v3067_v18  ;;  %v3109_v16 = vmul.f32 %v3267_v42, %v3067_v18 }
 0x523   :  { %3140 = vst [vmem:[#allocation5 + $0xc0] sm:$0xff] %v3108_v14  ;;  %3141 = vst [vmem:[#allocation5 + $0xc8] sm:$0xff] %v3109_v16 }
 0x524   :  { %v3077_v51 = vpop.permute.xlu0 %3076 }
 0x525   :  { %v3112_v12 = vmul.f32 %v3268_v48, %v3077_v51  ;;  %v3113_v6 = vmul.f32 %v3269_v49, %v3077_v51 }
 0x527   :  { %3144 = vst [vmem:[#allocation5 + $0xe0] sm:$0xff] %v3112_v12  ;;  %3145 = vst [vmem:[#allocation5 + $0xe8] sm:$0xff] %v3113_v6 }
 0x528   :  { %3303 = shalt.err (!%p3300_p12)
}
 0x529   :  { %s3304_s6 = scalar_lea.hbm %s4945_s5, 4096 }
 0x52a   :  { %p3305_p13 = scmp.ne.s32.totalorder %s4945_s5, %s3304_s6  ;;  %p3308_p0 = scmp.lt.u32.totalorder %s3304_s6, %s4945_s5 }
 0x52c   :  { %p3310_p1 = pnand %p3308_p0, %p3305_p13 }
 0x52e   :  { %3313 = shalt.err (!%p3310_p1)
}
 0x52f   :  { %3159 = dma.vmem_to_hbm [thread:$0]  %s3154_s25, 4096, %s4945_s5, [#allocation4], %s3319_s28, %s3319_s28, %s3320_s29  }
 0x530   :  { %3316 = dma.done.wait [#allocation4], 4096  }
 0x531   :  { %3317 = vsyncadd [#allocation4], 4294963200 }
 0x532   :  { %3163 = vsyncpa [#allocation3], 1 }
 0x533   :  { %3164 = vsyncpa [#allocation4], 1 }

</bundles_post_ra>
